<compile_context>
chip_gen: v7x
topology: tpu7x:2x2x1
jax: 0.10.0
libtpu: 0.0.40
codegen_flags: <defaults>
</compile_context>

<pallas_src>
import math
import functools

import jax
import jax.numpy as jnp
from jax.experimental import pallas as pl
from jax.experimental.pallas import tpu as pltpu


_NEG_BIG = -1e30  # finite "-inf" for the additive attention mask


def _attention_group_kernel(hs_ref, ctx_ref, maskb_ref,
                            wq_ref, bq_ref, wk_ref, bk_ref, wv_ref, bv_ref,
                            *rest,
                            group_size, head_size, add_abs_pos_emb):
    """One grid step == (batch b, head-group hg, query tile qi).

    Block shapes seen by the kernel:
      hs_ref    : (1, tq, H)    bf16   query-side activations (this q tile)
      ctx_ref   : (1, Sk, H)    bf16   key/value-side activations
      maskb_ref : (1, 1, Sk)    f32    additive mask bias (0 / -1e30)
      wq_ref    : (1, H, G*d)   bf16   Wq columns of this head group, pre-scaled by 1/sqrt(d)
      bq_ref    : (1, 1, G*d)   f32    pre-scaled query bias
      wk/bk, wv/bv                      analogous (unscaled)
      [posk_ref    : (Sk, d)    f32]   abs. pos. emb for keys (fused into K)
      [posbias_ref : (tq, Sk)   f32]   (posq @ posk^T) / sqrt(d), shared by all heads
      out_ref   : (1, tq, G*d)         direct column slab of the (B, Sq, H) output
      k_scr/v_scr : (G, Sk, d)  bf16   K/V cached across query tiles
    """
    if add_abs_pos_emb:
        posk_ref, posbias_ref, out_ref, k_scr, v_scr = rest
    else:
        posk_ref = posbias_ref = None
        out_ref, k_scr, v_scr = rest

    G = group_size
    d = head_size
    Sk = ctx_ref.shape[1]
    tq = hs_ref.shape[1]

    # ---- K/V projections: once per (batch, head-group), reused for every q tile.
    @pl.when(pl.program_id(2) == 0)
    def _():
        ctx = ctx_ref[0]                                                     # (Sk, H)
        k2 = jnp.dot(ctx, wk_ref[0], preferred_element_type=jnp.float32) + bk_ref[0]
        v2 = jnp.dot(ctx, wv_ref[0], preferred_element_type=jnp.float32) + bv_ref[0]
        kh = jnp.transpose(k2.reshape(Sk, G, d), (1, 0, 2))                  # (G, Sk, d)
        vh = jnp.transpose(v2.reshape(Sk, G, d), (1, 0, 2))
        if add_abs_pos_emb:
            # fused positional term: q_scaled @ (k + posk)^T
            kh = kh + posk_ref[...][None, :, :]
        k_scr[...] = kh.astype(jnp.bfloat16)
        v_scr[...] = vh.astype(jnp.bfloat16)

    # ---- Q projection for this tile (1/sqrt(d) already folded into Wq/bq).
    q2 = jnp.dot(hs_ref[0], wq_ref[0], preferred_element_type=jnp.float32) + bq_ref[0]
    qh = jnp.transpose(q2.reshape(tq, G, d), (1, 0, 2)).astype(jnp.bfloat16)  # (G, tq, d)

    # ---- Attention scores, batched over the heads of the group.
    s = jnp.einsum('gqd,gkd->gqk', qh, k_scr[...],
                   preferred_element_type=jnp.float32)                        # (G, tq, Sk)
    if add_abs_pos_emb:
        s = s + posbias_ref[...][None, :, :]      # pre-scaled (posq @ posk^T)/sqrt(d)
    s = s + maskb_ref[0]                          # (1, Sk) -> broadcast additive mask

    # ---- Softmax with deferred normalization.
    m = jnp.max(s, axis=-1, keepdims=True)
    p = jnp.exp(s - m)
    denom = jnp.sum(p, axis=-1, keepdims=True)

    ctx_h = jnp.einsum('gqk,gkd->gqd', p.astype(jnp.bfloat16), v_scr[...],
                       preferred_element_type=jnp.float32)                    # (G, tq, d)
    ctx_h = ctx_h * pl.reciprocal(denom, approx=True)   # normalize (G,tq,d), not (G,tq,Sk)

    # Heads re-merged on the last axis == PyTorch permute(0,2,1,3).view(B, Sq, H).
    out = jnp.transpose(ctx_h, (1, 0, 2)).reshape(tq, G * d)
    out_ref[0] = out.astype(out_ref.dtype)


def _pick_head_group(num_heads, head_size, target_lanes=256):
    """Smallest head-group whose fused width G*d reaches the MXU/lane target
    (256 for v6e/v7x; 128 already saturates v5e) while staying lane-aligned."""
    for g in range(1, num_heads + 1):
        if num_heads % g:
            continue
        gw = g * head_size
        if gw >= target_lanes and (gw % 128 == 0 or g == num_heads):
            return g
    return num_heads


def bert_attention(hidden_states, context, attention_mask,
                   wq, bq, wk, bk, wv, bv, abs_pos_emb,
                   *, num_heads, add_abs_pos_emb=True,
                   head_group_size=None, q_tile_size=None):
    B, Sq, H = hidden_states.shape
    _, Sk, _ = context.shape
    if H % num_heads != 0:
        raise ValueError("hidden size must be a multiple of num_heads")
    d = H // num_heads
    out_dtype = hidden_states.dtype
    scale = 1.0 / math.sqrt(d)

    # ---------------- head grouping / query tiling ----------------------------
    G = head_group_size if head_group_size is not None else _pick_head_group(num_heads, d)
    if num_heads % G != 0:
        raise ValueError("head_group_size must divide num_heads")
    n_groups = num_heads // G
    gw = G * d                               # fused output width per grid step

    tq = q_tile_size if q_tile_size is not None else min(Sq, 256)
    n_q = pl.cdiv(Sq, tq)

    # ---------------- glue (runs once in XLA, outside the kernel) -------------
    # nn.Linear weight (out, in), out features head-major -> (n_groups, H, G*d)
    # column slabs so every MXU operand in the kernel is full and lane-dense.
    def group_major(w, s=1.0):
        return (jnp.transpose(w.reshape(n_groups, gw, H), (0, 2, 1)) * s).astype(jnp.bfloat16)

    wq_g = group_major(wq, scale)                                  # scale folded into Q path
    wk_g = group_major(wk)
    wv_g = group_major(wv)
    bq_g = (bq.reshape(n_groups, 1, gw) * scale).astype(jnp.float32)
    bk_g = bk.reshape(n_groups, 1, gw).astype(jnp.float32)
    bv_g = bv.reshape(n_groups, 1, gw).astype(jnp.float32)

    hs_b = hidden_states.astype(jnp.bfloat16)
    ctx_b = context.astype(jnp.bfloat16)

    # Additive mask bias, precomputed once (finite large negative -> no NaNs).
    if attention_mask is None:
        mask_bias = jnp.zeros((B, 1, Sk), jnp.float32)
    else:
        m3 = attention_mask.reshape(B, 1, Sk)
        mask_bias = jnp.where(m3 > 0, 0.0, _NEG_BIG).astype(jnp.float32)

    in_arrays = [hs_b, ctx_b, mask_bias, wq_g, bq_g, wk_g, bk_g, wv_g, bv_g]
    in_specs = [
        pl.BlockSpec((1, tq, H), lambda b, hg, qi: (b, qi, 0)),    # hidden_states (bf16)
        pl.BlockSpec((1, Sk, H), lambda b, hg, qi: (b, 0, 0)),     # context       (bf16)
        pl.BlockSpec((1, 1, Sk), lambda b, hg, qi: (b, 0, 0)),     # mask bias     (f32)
        pl.BlockSpec((1, H, gw), lambda b, hg, qi: (hg, 0, 0)),    # Wq group slab (pre-scaled)
        pl.BlockSpec((1, 1, gw), lambda b, hg, qi: (hg, 0, 0)),    # bq group      (pre-scaled)
        pl.BlockSpec((1, H, gw), lambda b, hg, qi: (hg, 0, 0)),    # Wk group slab
        pl.BlockSpec((1, 1, gw), lambda b, hg, qi: (hg, 0, 0)),    # bk group
        pl.BlockSpec((1, H, gw), lambda b, hg, qi: (hg, 0, 0)),    # Wv group slab
        pl.BlockSpec((1, 1, gw), lambda b, hg, qi: (hg, 0, 0)),    # bv group
    ]

    if add_abs_pos_emb:
        if abs_pos_emb.shape[0] < max(Sq, Sk):
            raise ValueError("abs_pos_emb table shorter than sequence length")
        posq = abs_pos_emb[:Sq].astype(jnp.float32)                # (Sq, d)
        posk = abs_pos_emb[:Sk].astype(jnp.float32)                # (Sk, d)
        pos_bias = (jnp.dot(posq, posk.T) * scale).astype(jnp.float32)   # (Sq, Sk), all heads
        in_arrays += [posk, pos_bias]
        in_specs += [
            pl.BlockSpec((Sk, d), lambda b, hg, qi: (0, 0)),       # posk (grid-invariant)
            pl.BlockSpec((tq, Sk), lambda b, hg, qi: (qi, 0)),     # (posq @ posk^T)/sqrt(d)
        ]
    # else: positional operands are not passed at all (no zero DMAs / adds).

    out_spec = pl.BlockSpec((1, tq, gw), lambda b, hg, qi: (b, qi, hg))

    scratch = [pltpu.VMEM((G, Sk, d), jnp.bfloat16),   # K (+posk), cached across q tiles
               pltpu.VMEM((G, Sk, d), jnp.bfloat16)]   # V

    # ---------------- VMEM budget from the actual block footprint -------------
    blk_bytes = (tq * H * 2 + Sk * H * 2 + Sk * 4
                 + 3 * H * gw * 2 + 3 * gw * 4
                 + tq * gw * out_dtype.itemsize)
    if add_abs_pos_emb:
        blk_bytes += Sk * d * 4 + tq * Sk * 4
    scratch_bytes = 2 * G * Sk * d * 2
    vmem_limit = 2 * blk_bytes + scratch_bytes + 6 * G * tq * Sk * 4 + (8 << 20)
    vmem_limit = int(min(max(vmem_limit, 32 << 20), 100 << 20))

    kernel = functools.partial(_attention_group_kernel,
                               group_size=G, head_size=d,
                               add_abs_pos_emb=add_abs_pos_emb)

    grid_spec = pltpu.PrefetchScalarGridSpec(
        num_scalar_prefetch=0,
        grid=(B, n_groups, n_q),          # q tiles innermost: K/V scratch reused across them
        in_specs=in_specs,
        out_specs=out_spec,
        scratch_shapes=scratch,
    )

    return pl.pallas_call(
        kernel,
        out_shape=jax.ShapeDtypeStruct((B, Sq, H), out_dtype),
        grid_spec=grid_spec,
        compiler_params=pltpu.CompilerParams(
            dimension_semantics=("parallel", "parallel", "arbitrary"),
            vmem_limit_bytes=vmem_limit),
    )(*in_arrays)


def _reference(hidden_states, context, attention_mask,
               wq, bq, wk, bk, wv, bv, abs_pos_emb,
               *, num_heads, add_abs_pos_emb=True):
    """Plain-JAX (f32) reimplementation of the PyTorch forward for verification."""
    B, Sq, H = hidden_states.shape
    _, Sk, _ = context.shape
    d = H // num_heads

    def split_heads(x):
        return x.reshape(B, -1, num_heads, d).transpose(0, 2, 1, 3)

    q = split_heads(hidden_states @ wq.T + bq)           # (B, nh, Sq, d)
    k = split_heads(context @ wk.T + bk)                 # (B, nh, Sk, d)
    v = split_heads(context @ wv.T + bv)

    scores = jnp.einsum('bhqd,bhkd->bhqk', q, k)
    if add_abs_pos_emb:
        pos_k = abs_pos_emb[:Sk]
        pos_q = abs_pos_emb[:Sq]
        pos_scores = jnp.einsum('bhqd,kd->bhqk', q + pos_q[None, None], pos_k)
        scores = (scores + pos_scores) / math.sqrt(d)
    else:
        scores = scores / math.sqrt(d)

    if attention_mask is not None:
        m = attention_mask[:, None, None, :]              # (B,1,1,Sk)
        scores = scores + jnp.where(m == 0, -jnp.inf, 0.0)

    probs = jax.nn.softmax(scores, axis=-1)
    ctx = jnp.einsum('bhqk,bhkd->bhqd', probs, v)
    return ctx.transpose(0, 2, 1, 3).reshape(B, Sq, H)


if __name__ == "__main__":
    # NOTE: tiny demo shapes for the self-contained check; tune/benchmark at
    # production shapes (H=768/1024, d=64, Sq=Sk=128-512), not these.
    B, Sq, Sk = 2, 8, 16
    H, num_heads = 32, 4
    d = H // num_heads

    key = jax.random.PRNGKey(0)
    keys = jax.random.split(key, 10)

    hidden_states = jax.random.normal(keys[0], (B, Sq, H), dtype=jnp.float32)
    context = jax.random.normal(keys[1], (B, Sk, H), dtype=jnp.float32)

    # nn.Linear-style parameters: weight (out, in), bias (out,)
    wq = jax.random.normal(keys[2], (H, H), dtype=jnp.float32) * 0.05
    wk = jax.random.normal(keys[3], (H, H), dtype=jnp.float32) * 0.05
    wv = jax.random.normal(keys[4], (H, H), dtype=jnp.float32) * 0.05
    bq = jax.random.normal(keys[5], (H,), dtype=jnp.float32) * 0.05
    bk = jax.random.normal(keys[6], (H,), dtype=jnp.float32) * 0.05
    bv = jax.random.normal(keys[7], (H,), dtype=jnp.float32) * 0.05
    abs_pos_emb = jax.random.normal(keys[8], (512, d), dtype=jnp.float32)

    # Binary attention mask (1 = attend, 0 = masked); keep column 0 valid so the
    # f32/-inf reference does not produce NaN rows.
    attention_mask = (jax.random.uniform(keys[9], (B, Sk)) > 0.2).astype(jnp.float32)
    attention_mask = attention_mask.at[:, 0].set(1.0)

    # --- with absolute position embeddings ---
    out = bert_attention(hidden_states, context, attention_mask,
                         wq, bq, wk, bk, wv, bv, abs_pos_emb,
                         num_heads=num_heads, add_abs_pos_emb=True)
    out = jax.block_until_ready(out)
    ref = _reference(hidden_states, context, attention_mask,
                     wq, bq, wk, bk, wv, bv, abs_pos_emb,
                     num_heads=num_heads, add_abs_pos_emb=True)
    assert out.shape == (B, Sq, H)
    # bf16 MXU operands / approx reciprocal -> looser tolerance vs f32 reference.
    assert jnp.allclose(out, ref, atol=2e-2, rtol=2e-2), "mismatch vs reference (pos emb)"

    # --- without absolute position embeddings (positional operands not passed) ---
    out2 = bert_attention(hidden_states, context, attention_mask,
                          wq, bq, wk, bk, wv, bv, abs_pos_emb,
                          num_heads=num_heads, add_abs_pos_emb=False)
    out2 = jax.block_until_ready(out2)
    ref2 = _reference(hidden_states, context, attention_mask,
                      wq, bq, wk, bk, wv, bv, abs_pos_emb,
                      num_heads=num_heads, add_abs_pos_emb=False)
    assert jnp.allclose(out2, ref2, atol=2e-2, rtol=2e-2), "mismatch vs reference (no pos emb)"

    print("KERNEL_OK")
</pallas_src>

<mosaic_0001>
module attributes {stable_mosaic.version = 11 : i64} {
  func.func @_attention_group_kernel(%arg0: i32, %arg1: i32, %arg2: i32, %arg3: memref<1x8x32xbf16, #tpu.memory_space<vmem>>, %arg4: memref<1x16x32xbf16, #tpu.memory_space<vmem>>, %arg5: memref<1x1x16xf32, #tpu.memory_space<vmem>>, %arg6: memref<1x32x32xbf16, #tpu.memory_space<vmem>>, %arg7: memref<1x1x32xf32, #tpu.memory_space<vmem>>, %arg8: memref<1x32x32xbf16, #tpu.memory_space<vmem>>, %arg9: memref<1x1x32xf32, #tpu.memory_space<vmem>>, %arg10: memref<1x32x32xbf16, #tpu.memory_space<vmem>>, %arg11: memref<1x1x32xf32, #tpu.memory_space<vmem>>, %arg12: memref<16x8xf32, #tpu.memory_space<vmem>>, %arg13: memref<8x16xf32, #tpu.memory_space<vmem>>, %arg14: memref<1x8x32xf32, #tpu.memory_space<vmem>>, %arg15: memref<4x16x8xbf16, #tpu.memory_space<vmem>>, %arg16: memref<4x16x8xbf16, #tpu.memory_space<vmem>>) attributes {dimension_semantics = [#tpu.dimension_semantics<parallel>, #tpu.dimension_semantics<parallel>, #tpu.dimension_semantics<arbitrary>], iteration_bounds = array<i64: 2, 1, 1>, scalar_prefetch = 0 : i64, scratch_operands = 2 : i64, tpu.core_type = #tpu.core_type<tc>, window_params = [{transform_indices = @transform_0, window_bounds = array<i64: 1, 8, 32>}, {transform_indices = @transform_1, window_bounds = array<i64: 1, 16, 32>}, {transform_indices = @transform_2, window_bounds = array<i64: 1, 1, 16>}, {transform_indices = @transform_3, window_bounds = array<i64: 1, 32, 32>}, {transform_indices = @transform_4, window_bounds = array<i64: 1, 1, 32>}, {transform_indices = @transform_5, window_bounds = array<i64: 1, 32, 32>}, {transform_indices = @transform_6, window_bounds = array<i64: 1, 1, 32>}, {transform_indices = @transform_7, window_bounds = array<i64: 1, 32, 32>}, {transform_indices = @transform_8, window_bounds = array<i64: 1, 1, 32>}, {pipeline_mode = #tpu.pipeline_mode<synchronous>, transform_indices = @transform_9, window_bounds = array<i64: 16, 8>}, {transform_indices = @transform_10, window_bounds = array<i64: 8, 16>}, {transform_indices = @transform_11, window_bounds = array<i64: 1, 8, 32>}]} {
    %c0_i32 = arith.constant 0 : i32
    %0 = arith.cmpi eq, %arg2, %c0_i32 : i32
    %1 = arith.extui %0 : i1 to i32
    %c0_i32_0 = arith.constant 0 : i32
    %2 = arith.cmpi ne, %1, %c0_i32_0 : i32
    scf.if %2 {
      %c0_27 = arith.constant 0 : index
      %c0_28 = arith.constant 0 : index
      %c0_29 = arith.constant 0 : index
      %44 = vector.load %arg4[%c0_27, %c0_28, %c0_29] : memref<1x16x32xbf16, #tpu.memory_space<vmem>>, vector<1x16x32xbf16>
      %45 = vector.shape_cast %44 : vector<1x16x32xbf16> to vector<16x32xbf16>
      %c0_30 = arith.constant 0 : index
      %c0_31 = arith.constant 0 : index
      %c0_32 = arith.constant 0 : index
      %46 = vector.load %arg8[%c0_30, %c0_31, %c0_32] : memref<1x32x32xbf16, #tpu.memory_space<vmem>>, vector<1x32x32xbf16>
      %47 = vector.shape_cast %46 : vector<1x32x32xbf16> to vector<32x32xbf16>
      %cst_33 = arith.constant dense<0.000000e+00> : vector<16x32xf32>
      %48 = tpu.matmul %45, %47, %cst_33 {dimension_numbers = #tpu.dot_dimension_numbers<[1], [0], [0], [1], [0, 0, 1, 1], [], []>} : vector<16x32xbf16>, vector<32x32xbf16>, vector<16x32xf32> -> vector<16x32xf32>
      %c0_34 = arith.constant 0 : index
      %c0_35 = arith.constant 0 : index
      %c0_36 = arith.constant 0 : index
      %49 = vector.load %arg9[%c0_34, %c0_35, %c0_36] : memref<1x1x32xf32, #tpu.memory_space<vmem>>, vector<1x1x32xf32>
      %50 = vector.shape_cast %49 : vector<1x1x32xf32> to vector<1x32xf32>
      %51 = vector.broadcast %50 : vector<1x32xf32> to vector<16x32xf32>
      %52 = arith.addf %48, %51 : vector<16x32xf32>
      %c0_37 = arith.constant 0 : index
      %c0_38 = arith.constant 0 : index
      %c0_39 = arith.constant 0 : index
      %53 = vector.load %arg10[%c0_37, %c0_38, %c0_39] : memref<1x32x32xbf16, #tpu.memory_space<vmem>>, vector<1x32x32xbf16>
      %54 = vector.shape_cast %53 : vector<1x32x32xbf16> to vector<32x32xbf16>
      %cst_40 = arith.constant dense<0.000000e+00> : vector<16x32xf32>
      %55 = tpu.matmul %45, %54, %cst_40 {dimension_numbers = #tpu.dot_dimension_numbers<[1], [0], [0], [1], [0, 0, 1, 1], [], []>} : vector<16x32xbf16>, vector<32x32xbf16>, vector<16x32xf32> -> vector<16x32xf32>
      %c0_41 = arith.constant 0 : index
      %c0_42 = arith.constant 0 : index
      %c0_43 = arith.constant 0 : index
      %56 = vector.load %arg11[%c0_41, %c0_42, %c0_43] : memref<1x1x32xf32, #tpu.memory_space<vmem>>, vector<1x1x32xf32>
      %57 = vector.shape_cast %56 : vector<1x1x32xf32> to vector<1x32xf32>
      %58 = vector.broadcast %57 : vector<1x32xf32> to vector<16x32xf32>
      %59 = arith.addf %55, %58 : vector<16x32xf32>
      %60 = vector.shape_cast %52 : vector<16x32xf32> to vector<16x4x8xf32>
      %61 = tpu.transpose %60, [1, 0, 2] : vector<16x4x8xf32> -> vector<4x16x8xf32>
      %62 = vector.shape_cast %59 : vector<16x32xf32> to vector<16x4x8xf32>
      %63 = tpu.transpose %62, [1, 0, 2] : vector<16x4x8xf32> -> vector<4x16x8xf32>
      %c0_44 = arith.constant 0 : index
      %c0_45 = arith.constant 0 : index
      %64 = vector.load %arg12[%c0_44, %c0_45] : memref<16x8xf32, #tpu.memory_space<vmem>>, vector<16x8xf32>
      %65 = vector.shape_cast %64 : vector<16x8xf32> to vector<1x16x8xf32>
      %66 = vector.broadcast %65 : vector<1x16x8xf32> to vector<4x16x8xf32>
      %67 = arith.addf %61, %66 : vector<4x16x8xf32>
      %68 = arith.truncf %67 : vector<4x16x8xf32> to vector<4x16x8xbf16>
      %c0_46 = arith.constant 0 : index
      %c0_47 = arith.constant 0 : index
      %c0_48 = arith.constant 0 : index
      %69 = vector.load %arg15[%c0_46, %c0_47, %c0_48] : memref<4x16x8xbf16, #tpu.memory_space<vmem>>, vector<4x16x8xbf16>
      tpu.vector_store %arg15[%c0_46, %c0_47, %c0_48], %68 {strides = array<i32>} : memref<4x16x8xbf16, #tpu.memory_space<vmem>>, vector<4x16x8xbf16>,
      %70 = arith.truncf %63 : vector<4x16x8xf32> to vector<4x16x8xbf16>
      %c0_49 = arith.constant 0 : index
      %c0_50 = arith.constant 0 : index
      %c0_51 = arith.constant 0 : index
      %71 = vector.load %arg16[%c0_49, %c0_50, %c0_51] : memref<4x16x8xbf16, #tpu.memory_space<vmem>>, vector<4x16x8xbf16>
      tpu.vector_store %arg16[%c0_49, %c0_50, %c0_51], %70 {strides = array<i32>} : memref<4x16x8xbf16, #tpu.memory_space<vmem>>, vector<4x16x8xbf16>,
    } else {
    }
    %c0 = arith.constant 0 : index
    %c0_1 = arith.constant 0 : index
    %c0_2 = arith.constant 0 : index
    %3 = vector.load %arg3[%c0, %c0_1, %c0_2] : memref<1x8x32xbf16, #tpu.memory_space<vmem>>, vector<1x8x32xbf16>
    %4 = vector.shape_cast %3 : vector<1x8x32xbf16> to vector<8x32xbf16>
    %c0_3 = arith.constant 0 : index
    %c0_4 = arith.constant 0 : index
    %c0_5 = arith.constant 0 : index
    %5 = vector.load %arg6[%c0_3, %c0_4, %c0_5] : memref<1x32x32xbf16, #tpu.memory_space<vmem>>, vector<1x32x32xbf16>
    %6 = vector.shape_cast %5 : vector<1x32x32xbf16> to vector<32x32xbf16>
    %cst = arith.constant dense<0.000000e+00> : vector<8x32xf32>
    %7 = tpu.matmul %4, %6, %cst {dimension_numbers = #tpu.dot_dimension_numbers<[1], [0], [0], [1], [0, 0, 1, 1], [], []>} : vector<8x32xbf16>, vector<32x32xbf16>, vector<8x32xf32> -> vector<8x32xf32>
    %c0_6 = arith.constant 0 : index
    %c0_7 = arith.constant 0 : index
    %c0_8 = arith.constant 0 : index
    %8 = vector.load %arg7[%c0_6, %c0_7, %c0_8] : memref<1x1x32xf32, #tpu.memory_space<vmem>>, vector<1x1x32xf32>
    %9 = vector.shape_cast %8 : vector<1x1x32xf32> to vector<1x32xf32>
    %10 = vector.broadcast %9 : vector<1x32xf32> to vector<8x32xf32>
    %11 = arith.addf %7, %10 : vector<8x32xf32>
    %12 = vector.shape_cast %11 : vector<8x32xf32> to vector<8x4x8xf32>
    %13 = tpu.transpose %12, [1, 0, 2] : vector<8x4x8xf32> -> vector<4x8x8xf32>
    %14 = arith.truncf %13 : vector<4x8x8xf32> to vector<4x8x8xbf16>
    %c0_9 = arith.constant 0 : index
    %c0_10 = arith.constant 0 : index
    %c0_11 = arith.constant 0 : index
    %15 = vector.load %arg15[%c0_9, %c0_10, %c0_11] : memref<4x16x8xbf16, #tpu.memory_space<vmem>>, vector<4x16x8xbf16>
    "tpu.trace_start"() <{level = 10 : i32, message = "gqd,gkd->gqk"}> : () -> ()
    %cst_12 = arith.constant dense<0.000000e+00> : vector<4x8x16xf32>
    %16 = tpu.matmul %14, %15, %cst_12 {dimension_numbers = #tpu.dot_dimension_numbers<[2], [2], [1], [1], [0, 0, 0, 1, 1, 1], [0], [0]>} : vector<4x8x8xbf16>, vector<4x16x8xbf16>, vector<4x8x16xf32> -> vector<4x8x16xf32>
    "tpu.trace_stop"() : () -> ()
    %c0_13 = arith.constant 0 : index
    %c0_14 = arith.constant 0 : index
    %17 = vector.load %arg13[%c0_13, %c0_14] : memref<8x16xf32, #tpu.memory_space<vmem>>, vector<8x16xf32>
    %18 = vector.shape_cast %17 : vector<8x16xf32> to vector<1x8x16xf32>
    %19 = vector.broadcast %18 : vector<1x8x16xf32> to vector<4x8x16xf32>
    %20 = arith.addf %16, %19 : vector<4x8x16xf32>
    %c0_15 = arith.constant 0 : index
    %c0_16 = arith.constant 0 : index
    %c0_17 = arith.constant 0 : index
    %21 = vector.load %arg5[%c0_15, %c0_16, %c0_17] : memref<1x1x16xf32, #tpu.memory_space<vmem>>, vector<1x1x16xf32>
    %22 = vector.shape_cast %21 : vector<1x1x16xf32> to vector<1x16xf32>
    %23 = vector.shape_cast %22 : vector<1x16xf32> to vector<1x1x16xf32>
    %24 = vector.broadcast %23 : vector<1x1x16xf32> to vector<4x8x16xf32>
    %25 = arith.addf %20, %24 : vector<4x8x16xf32>
    %cst_18 = arith.constant dense<0xFF800000> : vector<4x8xf32>
    %26 = vector.multi_reduction <maximumf>, %25, %cst_18 [2] : vector<4x8x16xf32> to vector<4x8xf32>
    %27 = vector.shape_cast %26 : vector<4x8xf32> to vector<4x8x1xf32>
    %28 = vector.broadcast %27 : vector<4x8x1xf32> to vector<4x8x16xf32>
    %29 = arith.subf %25, %28 : vector<4x8x16xf32>
    %30 = math.exp %29 : vector<4x8x16xf32>
    %cst_19 = arith.constant dense<0.000000e+00> : vector<4x8xf32>
    %31 = vector.multi_reduction <add>, %30, %cst_19 [2] : vector<4x8x16xf32> to vector<4x8xf32>
    %32 = vector.shape_cast %31 : vector<4x8xf32> to vector<4x8x1xf32>
    %33 = arith.truncf %30 : vector<4x8x16xf32> to vector<4x8x16xbf16>
    %c0_20 = arith.constant 0 : index
    %c0_21 = arith.constant 0 : index
    %c0_22 = arith.constant 0 : index
    %34 = vector.load %arg16[%c0_20, %c0_21, %c0_22] : memref<4x16x8xbf16, #tpu.memory_space<vmem>>, vector<4x16x8xbf16>
    "tpu.trace_start"() <{level = 10 : i32, message = "gqk,gkd->gqd"}> : () -> ()
    %cst_23 = arith.constant dense<0.000000e+00> : vector<4x8x8xf32>
    %35 = tpu.matmul %33, %34, %cst_23 {dimension_numbers = #tpu.dot_dimension_numbers<[2], [1], [1], [2], [0, 0, 0, 1, 1, 2], [0], [0]>} : vector<4x8x16xbf16>, vector<4x16x8xbf16>, vector<4x8x8xf32> -> vector<4x8x8xf32>
    "tpu.trace_stop"() : () -> ()
    %36 = tpu.reciprocal %32 {approx = true} : vector<4x8x1xf32> -> vector<4x8x1xf32>
    %37 = vector.broadcast %36 : vector<4x8x1xf32> to vector<4x8x8xf32>
    %38 = arith.mulf %35, %37 : vector<4x8x8xf32>
    %39 = tpu.transpose %38, [1, 0, 2] : vector<4x8x8xf32> -> vector<8x4x8xf32>
    %40 = vector.shape_cast %39 : vector<8x4x8xf32> to vector<8x32xf32>
    %c0_24 = arith.constant 0 : index
    %c0_25 = arith.constant 0 : index
    %c0_26 = arith.constant 0 : index
    %41 = vector.load %arg14[%c0_24, %c0_25, %c0_26] : memref<1x8x32xf32, #tpu.memory_space<vmem>>, vector<1x8x32xf32>
    %42 = vector.shape_cast %41 : vector<1x8x32xf32> to vector<8x32xf32>
    %43 = vector.shape_cast %40 : vector<8x32xf32> to vector<1x8x32xf32>
    tpu.vector_store %arg14[%c0_24, %c0_25, %c0_26], %43 {strides = array<i32>} : memref<1x8x32xf32, #tpu.memory_space<vmem>>, vector<1x8x32xf32>,
    return
  }
  func.func @transform_0(%arg0: i32, %arg1: i32, %arg2: i32) -> (i32, i32, i32) {
    %c0_i32 = arith.constant 0 : i32
    %c0_i32_0 = arith.constant 0 : i32
    return %arg0, %arg2, %c0_i32 : i32, i32, i32
  }
  func.func @transform_1(%arg0: i32, %arg1: i32, %arg2: i32) -> (i32, i32, i32) {
    %c0_i32 = arith.constant 0 : i32
    %c0_i32_0 = arith.constant 0 : i32
    %c0_i32_1 = arith.constant 0 : i32
    return %arg0, %c0_i32, %c0_i32_0 : i32, i32, i32
  }
  func.func @transform_2(%arg0: i32, %arg1: i32, %arg2: i32) -> (i32, i32, i32) {
    %c0_i32 = arith.constant 0 : i32
    %c0_i32_0 = arith.constant 0 : i32
    %c0_i32_1 = arith.constant 0 : i32
    return %arg0, %c0_i32, %c0_i32_0 : i32, i32, i32
  }
  func.func @transform_3(%arg0: i32, %arg1: i32, %arg2: i32) -> (i32, i32, i32) {
    %c0_i32 = arith.constant 0 : i32
    %c0_i32_0 = arith.constant 0 : i32
    %c0_i32_1 = arith.constant 0 : i32
    return %arg1, %c0_i32, %c0_i32_0 : i32, i32, i32
  }
  func.func @transform_4(%arg0: i32, %arg1: i32, %arg2: i32) -> (i32, i32, i32) {
    %c0_i32 = arith.constant 0 : i32
    %c0_i32_0 = arith.constant 0 : i32
    %c0_i32_1 = arith.constant 0 : i32
    return %arg1, %c0_i32, %c0_i32_0 : i32, i32, i32
  }
  func.func @transform_5(%arg0: i32, %arg1: i32, %arg2: i32) -> (i32, i32, i32) {
    %c0_i32 = arith.constant 0 : i32
    %c0_i32_0 = arith.constant 0 : i32
    %c0_i32_1 = arith.constant 0 : i32
    return %arg1, %c0_i32, %c0_i32_0 : i32, i32, i32
  }
  func.func @transform_6(%arg0: i32, %arg1: i32, %arg2: i32) -> (i32, i32, i32) {
    %c0_i32 = arith.constant 0 : i32
    %c0_i32_0 = arith.constant 0 : i32
    %c0_i32_1 = arith.constant 0 : i32
    return %arg1, %c0_i32, %c0_i32_0 : i32, i32, i32
  }
  func.func @transform_7(%arg0: i32, %arg1: i32, %arg2: i32) -> (i32, i32, i32) {
    %c0_i32 = arith.constant 0 : i32
    %c0_i32_0 = arith.constant 0 : i32
    %c0_i32_1 = arith.constant 0 : i32
    return %arg1, %c0_i32, %c0_i32_0 : i32, i32, i32
  }
  func.func @transform_8(%arg0: i32, %arg1: i32, %arg2: i32) -> (i32, i32, i32) {
    %c0_i32 = arith.constant 0 : i32
    %c0_i32_0 = arith.constant 0 : i32
    %c0_i32_1 = arith.constant 0 : i32
    return %arg1, %c0_i32, %c0_i32_0 : i32, i32, i32
  }
  func.func @transform_9(%arg0: i32, %arg1: i32, %arg2: i32) -> (i32, i32) {
    %c0_i32 = arith.constant 0 : i32
    %c0_i32_0 = arith.constant 0 : i32
    %c0_i32_1 = arith.constant 0 : i32
    return %c0_i32, %c0_i32_0 : i32, i32
  }
  func.func @transform_10(%arg0: i32, %arg1: i32, %arg2: i32) -> (i32, i32) {
    %c0_i32 = arith.constant 0 : i32
    %c0_i32_0 = arith.constant 0 : i32
    return %arg2, %c0_i32 : i32, i32
  }
  func.func @transform_11(%arg0: i32, %arg1: i32, %arg2: i32) -> (i32, i32, i32) {
    %c0_i32 = arith.constant 0 : i32
    return %arg0, %arg2, %arg1 : i32, i32, i32
  }
}

</mosaic_0001>

<bundles_post_ra>
// kernel: tpu_custom_call.1
= control target key start
LH: loop header
LB: loop body
LE: loop exit
PB: predicated region body
PF: predicated region fallthrough
CT: control target
= control target key end

     0   :  { %s3563_s0 = inlined_call_operand.hbm [shape: bf16[2,8,32], index: 0, kind: input, shape index: {}]   ;;  %s3564_s1 = inlined_call_operand.vmem [shape: bf16[2,16,32], index: 1, kind: input, shape index: {}]   ;;  %s3565_s2 = inlined_call_operand.vmem [shape: f32[2,1,16], index: 2, kind: input, shape index: {}]   ;;  %s3566_s3 = inlined_call_operand.vmem [shape: bf16[1,32,32], index: 3, kind: input, shape index: {}]   ;;  %s3567_s4 = inlined_call_operand.hbm [shape: f32[1,1,32], index: 4, kind: input, shape index: {}]   ;;  %s3568_s5 = inlined_call_operand.hbm [shape: bf16[1,32,32], index: 5, kind: input, shape index: {}]   ;;  %s3569_s6 = inlined_call_operand.hbm [shape: f32[1,1,32], index: 6, kind: input, shape index: {}]   ;;  %s3570_s7 = inlined_call_operand.vmem [shape: bf16[1,32,32], index: 7, kind: input, shape index: {}]   ;;  %s3571_s8 = inlined_call_operand.hbm [shape: f32[1,1,32], index: 8, kind: input, shape index: {}]   ;;  %s3572_s9 = inlined_call_operand.vmem [shape: f32[16,8], index: 9, kind: input, shape index: {}]   ;;  %s3573_s10 = inlined_call_operand.hbm [shape: f32[8,16], index: 10, kind: input, shape index: {}]   ;;  %s3574_s11 = inlined_call_operand.hbm [shape: f32[2,8,32], index: 11, kind: output, shape index: {}]  }
   0x1   :  { %3584 = sst [smem:[#allocation21_spill]] %s3565_s2 }
   0x2   :  { %3585 = sst [smem:[#allocation22_spill]] %s3566_s3 }
   0x3   :  { %3586 = sst [smem:[#allocation23_spill]] %s3567_s4 }
   0x4   :  { %3587 = sst [smem:[#allocation24_spill]] %s3569_s6 }
   0x5   :  { %3588 = sst [smem:[#allocation25_spill]] %s3570_s7 }
   0x6   :  { %3589 = sst [smem:[#allocation26_spill]] %s3572_s9 }
   0x7   :  { %3590 = sst [smem:[#allocation27_spill]] %s3574_s11 }
   0x8   :  { %16 = vsyncpa [#allocation5], 0 }
   0x9   :  { %18 = vsyncpa [#allocation5 + $0x1], 0 }
   0xa   :  { %19 = vsyncpa [#allocation8], 0 }
   0xb   :  { %20 = vsyncpa [#allocation11], 0 }
   0xc   :  { %21 = vsyncpa [#allocation14], 0 }
   0xd   :  { %22 = vsyncpa [#allocation6], 0 }
   0xe   :  { %24 = vsyncpa [#allocation6 + $0x1], 0  ;;  %s3016_s17 = smov 0   ;;  %s3018_s18 = smov 0  }
   0xf   :  { %s3020_s19 = smov 0   ;;  %s3022_s20 = smov 0  }
  0x10   :  { %s3024_s21 = smov 0   ;;  %s3026_s22 = smov 0  }
  0x11 LB: > { %s3575_s23 = sadd.s32 4294967295, %s2935_s22   ;;  %p2366_p0 = scmp.ge.s32.totalorder %s2935_s22, 1  ;;  %s2935_s22 = sphi %s3026_s22, %s30_s22   ;;  %s2931_s21 = sphi %s3024_s21, %s3618_s21   ;;  %s2927_s20 = sphi %s3022_s20, %s3617_s20   ;;  %s2923_s19 = sphi %s3020_s19, %s3616_s19   ;;  %s2919_s18 = sphi %s3018_s18, %s3615_s18   ;;  %s2915_s17 = sphi %s3016_s17, %s3614_s17  }
  0x12   : > { %p3050_p1 = scmp.eq.s32.totalorder %s3575_s23, 0  ;;  %p367_p2 = scmp.lt.s32.totalorder %s2935_s22, 3 }
  0x13   : > { %s2937_s26 = smov [#allocation7]   ;;  %s2938_s28 = smov [#allocation10]  }
  0x14   : > { %s3591_s24 = scalar_select %p3050_p1, 1, 0 }
  0x15   : > { %p3055_p3 = pnand %p2366_p0, %p367_p2  ;;  %s390_s27 = sshll.u32 %s2937_s26, 4  ;;  %s391_s27 = int_to_ptr.vmem [resolvable:$true] %s390_s27 }
  0x16   : > { %s419_s29 = sshll.u32 %s2938_s28, 4  ;;  %s2939_s12 = smov [#allocation9]   ;;  %s3068_s29 = int_to_ptr.vmem [resolvable:$true] %s419_s29 }
  0x17   : > { %s3592_s25 = scalar_select %p3055_p3, 1, 0 }
  0x18   : > { %p2547_p5 = pneg %p3055_p3  ;;  %s403_s13 = sshll.u32 %s2939_s12, 4  ;;  %s3070_s13 = int_to_ptr.vmem [resolvable:$true] %s403_s13 }
  0x19   : > { %s3594_s4 = sld [smem:[#allocation23_spill]] }
  0x1a   : > { %p3064_p6 = pnand %p2547_p5, %p3050_p1 }
  0x1c   : > { %p3080_p8 = pneg %p3064_p6 }
  0x1f   : > { %s2671_s16 = scalar_lea.hbm %s3594_s4, 16 }
  0x20   : > { %p2672_p7 = scmp.ne.s32.totalorder %s3594_s4, %s2671_s16  ;;  %p2678_p11 = scmp.lt.u32.totalorder %s2671_s16, %s3594_s4 }
  0x22   : > { %p2674_p9 = pnand %p3080_p8, %p2672_p7 }
  0x24   : > { %p2675_p10 = pneg %p2674_p9 }
  0x26   : > { %p2680_p12 = pnand %p2678_p11, %p2675_p10 }
  0x28   : > { %2683 = shalt.err (!%p2680_p12)
}
  0x29   : > { %s2684_s14 = scalar_lea.vmem %s391_s27, 16  ;;  %s2691_s23 = scalar_lea.vmem %s391_s27, 32 }
  0x2a   : > { %p2685_p13 = scmp.ne.s32.totalorder %s391_s27, %s2684_s14  ;;  %p2692_p5 = scmp.lt.s32.totalorder %s391_s27, %s391_s27 }
  0x2b   : > { %p2693_p4 = scmp.lt.s32.totalorder %s2691_s23, %s2684_s14 }
  0x2c   : > { %p2687_p0 = pnand %p2685_p13, %p3080_p8 }
  0x2d   : > { %p2694_p3 = por %p2693_p4, %p2692_p5 }
  0x2e   : > { %p2688_p2 = pneg %p2687_p0 }
  0x30   : > { %p2695_p1 = pnand %p2694_p3, %p2688_p2 }
  0x32   : > { %2698 = shalt.err (!%p2695_p1)
}
  0x33   : > { %2550 = dma.hbm_to_vmem [thread:$0]  (!%p3064_p6), %s3594_s4, 16, %s391_s27, [#allocation8]  }
  0x34   : > { %s3596_s6 = sld [smem:[#allocation24_spill]] }
  0x3a   : > { %s2699_s12 = scalar_lea.hbm %s3596_s6, 16 }
  0x3b   : > { %p2700_p7 = scmp.ne.s32.totalorder %s3596_s6, %s2699_s12  ;;  %p2706_p1 = scmp.lt.u32.totalorder %s2699_s12, %s3596_s6 }
  0x3d   : > { %p2702_p9 = pnand %p2700_p7, %p3080_p8 }
  0x3f   : > { %p2703_p4 = pneg %p2702_p9 }
  0x41   : > { %p2708_p3 = pnand %p2706_p1, %p2703_p4 }
  0x43   : > { %2711 = shalt.err (!%p2708_p3)
}
  0x44   : > { %s2712_s27 = scalar_lea.vmem %s3068_s29, 16  ;;  %s2719_s2 = scalar_lea.vmem %s3068_s29, 32 }
  0x45   : > { %p2713_p10 = scmp.ne.s32.totalorder %s3068_s29, %s2712_s27  ;;  %p2720_p13 = scmp.lt.s32.totalorder %s3068_s29, %s3068_s29 }
  0x46   : > { %p2721_p0 = scmp.lt.s32.totalorder %s2719_s2, %s2712_s27 }
  0x47   : > { %p2715_p11 = pnand %p2713_p10, %p3080_p8 }
  0x48   : > { %p2722_p2 = por %p2721_p0, %p2720_p13 }
  0x49   : > { %p2716_p12 = pneg %p2715_p11 }
  0x4b   : > { %p2723_p5 = pnand %p2722_p2, %p2716_p12 }
  0x4d   : > { %2726 = shalt.err (!%p2723_p5)
}
  0x4e   : > { %2556 = dma.hbm_to_vmem [thread:$0]  (!%p3064_p6), %s3596_s6, 16, %s3068_s29, [#allocation11]  }
  0x4f   : > { %s2727_s16 = scalar_lea.hbm %s3568_s5, 256 }
  0x50   : > { %p2728_p7 = scmp.ne.s32.totalorder %s3568_s5, %s2727_s16  ;;  %p2734_p1 = scmp.lt.u32.totalorder %s2727_s16, %s3568_s5 }
  0x52   : > { %p2730_p9 = pnand %p2728_p7, %p3080_p8 }
  0x54   : > { %p2731_p4 = pneg %p2730_p9 }
  0x56   : > { %p2736_p3 = pnand %p2734_p1, %p2731_p4 }
  0x58   : > { %2739 = shalt.err (!%p2736_p3)
}
  0x59   : > { %s2740_s29 = scalar_lea.vmem %s3070_s13, 256  ;;  %p2748_p13 = scmp.lt.s32.totalorder %s3070_s13, %s3070_s13 }
  0x5a   : > { %p2741_p10 = scmp.ne.s32.totalorder %s3070_s13, %s2740_s29  ;;  %p2749_p0 = scmp.lt.s32.totalorder %s2740_s29, %s2740_s29 }
  0x5c   : > { %p2743_p11 = pnand %p2741_p10, %p3080_p8  ;;  %p2750_p2 = por %p2749_p0, %p2748_p13 }
  0x5e   : > { %p2744_p12 = pneg %p2743_p11 }
  0x60   : > { %p2751_p5 = pnand %p2750_p2, %p2744_p12 }
  0x62   : > { %2754 = shalt.err (!%p2751_p5)
}
  0x63   : > { %s2940_s2 = smov 64   ;;  %s2941_s9 = smov 4  }
  0x64   : > { %2553 = dma.hbm_to_vmem [thread:$0]  (!%p3064_p6), %s3568_s5, 256, %s3070_s13, [#allocation8], %s2940_s2, %s2940_s2, %s2941_s9  }
  0x65   : > { %s2942_s11 = smov [#allocation12]   ;;  %s2943_s12 = smov [#allocation13]  }
  0x66   : > { %s440_s16 = sshll.u32 %s2942_s11, 4  ;;  %s456_s14 = sshll.u32 %s2943_s12, 4  ;;  %s441_s16 = int_to_ptr.vmem [resolvable:$true] %s440_s16  ;;  %s457_s14 = int_to_ptr.vmem [resolvable:$true] %s456_s14 }
  0x67   : > { %s2755_s29 = scalar_lea.hbm %s3571_s8, 16 }
  0x68   : > { %p2756_p7 = scmp.ne.s32.totalorder %s3571_s8, %s2755_s29  ;;  %p2762_p1 = scmp.lt.u32.totalorder %s2755_s29, %s3571_s8 }
  0x6a   : > { %p2758_p9 = pnand %p2756_p7, %p3080_p8 }
  0x6c   : > { %p2759_p4 = pneg %p2758_p9 }
  0x6e   : > { %p2764_p3 = pnand %p2762_p1, %p2759_p4 }
  0x70   : > { %2767 = shalt.err (!%p2764_p3)
}
  0x71   : > { %s2768_s13 = scalar_lea.vmem %s441_s16, 16  ;;  %s2775_s2 = scalar_lea.vmem %s441_s16, 32 }
  0x72   : > { %p2769_p10 = scmp.ne.s32.totalorder %s441_s16, %s2768_s13  ;;  %p2776_p13 = scmp.lt.s32.totalorder %s441_s16, %s441_s16 }
  0x73   : > { %p2777_p0 = scmp.lt.s32.totalorder %s2775_s2, %s2768_s13 }
  0x74   : > { %p2771_p11 = pnand %p2769_p10, %p3080_p8 }
  0x75   : > { %p2778_p2 = por %p2777_p0, %p2776_p13 }
  0x76   : > { %p2772_p12 = pneg %p2771_p11 }
  0x78   : > { %p2779_p5 = pnand %p2778_p2, %p2772_p12 }
  0x7a   : > { %2782 = shalt.err (!%p2779_p5)
}
  0x7b   : > { %2559 = dma.hbm_to_vmem [thread:$0]  (!%p3064_p6), %s3571_s8, 16, %s441_s16, [#allocation11]  }
  0x7c   : > { %s2783_s9 = scalar_lea.hbm %s3573_s10, 128 }
  0x7d   : > { %p2784_p7 = scmp.ne.s32.totalorder %s3573_s10, %s2783_s9  ;;  %p2790_p1 = scmp.lt.u32.totalorder %s2783_s9, %s3573_s10 }
  0x7f   : > { %p2786_p9 = pnand %p2784_p7, %p3080_p8 }
  0x81   : > { %p2787_p4 = pneg %p2786_p9 }
  0x83   : > { %p2792_p3 = pnand %p2790_p1, %p2787_p4 }
  0x85   : > { %2795 = shalt.err (!%p2792_p3)
}
  0x86   : > { %s2796_s23 = scalar_lea.vmem %s457_s14, 128  ;;  %p2804_p13 = scmp.lt.s32.totalorder %s457_s14, %s457_s14 }
  0x87   : > { %p2797_p10 = scmp.ne.s32.totalorder %s457_s14, %s2796_s23  ;;  %p2805_p0 = scmp.lt.s32.totalorder %s2796_s23, %s2796_s23 }
  0x89   : > { %p2799_p11 = pnand %p2797_p10, %p3080_p8  ;;  %p2806_p2 = por %p2805_p0, %p2804_p13 }
  0x8b   : > { %p2800_p12 = pneg %p2799_p11 }
  0x8d   : > { %p2807_p5 = pnand %p2806_p2, %p2800_p12 }
  0x8f   : > { %2810 = shalt.err (!%p2807_p5)
}
  0x90   : > { %2562 = dma.hbm_to_vmem [thread:$0]  (!%p3064_p6), %s3573_s10, 128, %s457_s14, [#allocation14]  }
  0x91   : > { %s2365_s28 = sadd.s32 4294967294, %s2935_s22   ;;  %s49_s29 = sadd.s32 1, %s2931_s21 }
  0x92   : > { %s58_s30 = sadd.s32 1, %s2923_s19  ;;  %p51_p8 = scmp.ge.s32.totalorder %s49_s29, 2 }
  0x93   : > { %p65_p7 = scmp.ne.s32.totalorder %s2923_s19, %s2919_s18  ;;  %p66_p9 = scmp.eq.s32.totalorder %s2935_s22, 0 }
  0x94   : > { %p71_p4 = scmp.ne.s32.totalorder %s2919_s18, %s2915_s17  ;;  %s3620_s29 = smov (%p51_p8, %s49_s29), 0 }
  0x95   : > { %p3189_p1 = por %p66_p9, %p65_p7  ;;  %p3598_p3 = scmp.ne.s32.totalorder %s3591_s24, 0 }
  0x96   : > { %s53_s2 = ssub.s32 %s2931_s21, %s3620_s29  ;;  %s3600_s4 = sadd.s32 4294967295, %s2935_s22  }
  0x97   : > { %p3195_p6 = por %p3598_p3, %p71_p4  ;;  %p354_p10 = scmp.eq.s32.totalorder %s3600_s4, 1 }
  0x98   : > { %p56_p11 = scmp.eq.s32.totalorder %s53_s2, 0  ;;  %p360_p12 = scmp.eq.s32.totalorder %s2365_s28, 1 }
  0x99   : > { %p3203_p13 = por %p354_p10, %p65_p7  ;;  %p2576_p0 = scmp.lt.s32.totalorder %s2935_s22, 2 }
  0x9a   : > { %s3209_s3 = scalar_select %p56_p11, %s2923_s19, %s58_s30  }
  0x9b   : > { %s3601_s6 = scalar_select %p3203_p13, 1, 0 }
  0x9c   : > { %p3211_p2 = por %p360_p12, %p71_p4  ;;  %s467_s9 = sand.u32 1, %s2923_s19  }
  0x9d   : > { %s2375_s15 = sshll.u32 %s467_s9, 2  ;;  %s2376_s26 = sshll.u32 %s2931_s21, 6 }
  0x9e   : > { %s3602_s7 = scalar_select %p3211_p2, 1, 0 }
  0x9f   : > { %s3220_s23 = scalar_lea.hbm %s3563_s0, %s2376_s26  ;;  %s471_s16 = scalar_lea.vmem [#allocation4], %s2375_s15 }
  0xa0   : > { %s479_s27 = sshll.u32 %s471_s16, 4  ;;  %p3226_p5 = pnand %p2576_p0, %p3189_p1  ;;  %s3222_s27 = int_to_ptr.vmem [resolvable:$true] %s479_s27 }
  0xa1   : > { %s468_s30 = scalar_lea.sflag [#allocation5], %s467_s9  ;;  %s2811_s2 = scalar_lea.hbm %s3220_s23, 64 }
  0xa2   : > { %p2812_p8 = scmp.ne.s32.totalorder %s3220_s23, %s2811_s2  ;;  %p2813_p7 = pneg %p3226_p5 }
  0xa3   : > { %s2816_s26 = scalar_lea.hbm %s3563_s0, 128  ;;  %p2817_p1 = scmp.lt.u32.totalorder %s3220_s23, %s3563_s0 }
  0xa4   : > { %p2814_p9 = pnand %p2813_p7, %p2812_p8  ;;  %p2818_p3 = scmp.lt.u32.totalorder %s2816_s26, %s2811_s2 }
  0xa5   : > { %p2820_p11 = scmp.lt.u32.totalorder %s2811_s2, %s3220_s23 }
  0xa6   : > { %p2815_p4 = pneg %p2814_p9  ;;  %p2819_p10 = por %p2818_p3, %p2817_p1 }
  0xa8   : > { %p2821_p12 = por %p2820_p11, %p2819_p10 }
  0xaa   : > { %p2822_p0 = pnand %p2821_p12, %p2815_p4 }
  0xac   : > { %2825 = shalt.err (!%p2822_p0)
}
  0xad   : > { %s2826_s9 = scalar_lea.vmem %s3222_s27, 64  ;;  %s2944_s12 = smov [#allocation4]  }
  0xae   : > { %p2827_p8 = scmp.ne.s32.totalorder %s3222_s27, %s2826_s9  ;;  %s2831_s16 = sshll.u32 %s2944_s12, 4  ;;  %s2832_s16 = int_to_ptr.vmem [resolvable:$false] %s2831_s16 }
  0xaf   : > { %s2833_s4 = scalar_lea.vmem %s2832_s16, 128  ;;  %p2834_p13 = scmp.lt.s32.totalorder %s3222_s27, %s2832_s16 }
  0xb0   : > { %p2829_p9 = pnand %p2827_p8, %p2813_p7  ;;  %p2835_p1 = scmp.lt.s32.totalorder %s2833_s4, %s2826_s9 }
  0xb2   : > { %p2830_p2 = pneg %p2829_p9  ;;  %p2836_p3 = por %p2835_p1, %p2834_p13 }
  0xb4   : > { %p2837_p10 = pnand %p2836_p3, %p2830_p2 }
  0xb6   : > { %2840 = shalt.err (!%p2837_p10)
}
  0xb7   : > { %2566 = dma.hbm_to_vmem [thread:$0]  (!%p3226_p5), %s3220_s23, 64, %s3222_s27, %s468_s30  }
  0xb8   : > { %p3604_p4 = scmp.ne.s32.totalorder %s3592_s25, 0 }
  0xb9   : > { %s3258_s2 = sand.u32 (!%p3604_p4), 1, %s2919_s18  }
  0xba   : > { %502 = sbr.rel (%p3604_p4) target bundleno = 1340 (0x53c), region = 64  ;;  %s2378_s15 = sshll.u32 (!%p3604_p4), %s3258_s2, 2 }
  0xbb   : > { %s505_s26 = scalar_lea.sflag (!%p3604_p4), [#allocation5], %s3258_s2  ;;  %s3262_s13 = scalar_lea.vmem (!%p3604_p4), [#allocation4], %s2378_s15 }
  0xc1   : > { %2894 = dma.done.wait (%p3195_p6), %s505_s26, 64  }
  0xc2   : > { %2896 = vsyncadd (%p3195_p6), %s505_s26, 4294967232  ;;  %p3605_p13 = scmp.ne.s32.totalorder %s3591_s24, 0 }
  0xc4   : > { %2898 = dma.done.wait (%p3605_p13), [#allocation8], 272  }
  0xc5   : > { %2900 = vsyncadd (%p3605_p13), [#allocation8], 4294967024 }
  0xc6   : > { %2902 = dma.done.wait (%p3605_p13), [#allocation11], 32  }
  0xc7   : > { %2904 = vsyncadd (%p3605_p13), [#allocation11], 4294967264 }
  0xc8   : > { %2906 = dma.done.wait (%p3605_p13), [#allocation14], 128  }
  0xc9   : > { %2908 = vsyncadd (%p3605_p13), [#allocation14], 4294967168  ;;  %p585_p6 = scmp.lt.s32.totalorder %s2927_s20, 1  ;;  %v2945_v0 = vmov 0.0   ;;  %vm2946_vm0 = vmmov 0   ;;  %v2648_v1 = vld [vmem:[#allocation9] sm:$0xff]   ;;  %v772_v31 = vlaneseq }
  0xca   : > { %2451 = vmatprep.subr.bf16.mxu0 %v2945_v0  ;;  %2455 = vmatprep.mubr.msk.bf16.mxu0 %vm2946_vm0, %v2945_v0  ;;  %v2649_v2 = vld [vmem:[#allocation9 + $0x8] sm:$0xff]   ;;  %s3606_s11 = sld [smem:[#allocation22_spill]]  ;;  %vm638_vm1 = vcmask 261120   ;;  %s3607_s16 = sld [smem:[#allocation25_spill]]  ;;  %v1358_v8 = vld [vmem:[%s3262_s13] sm:$0xf] }
  0xcb   : > { %s3285_s25 = scalar_select %p585_p6, %s2927_s20, 1  ;;  %2459 = vmatprep.subr.bf16.mxu1 %v2945_v0  ;;  %2463 = vmatprep.mubr.msk.bf16.mxu1 %vm2946_vm0, %v2945_v0  ;;  %v2387_v9 = vld [vmem:[#allocation10] ss:$0 sm:$0xff]  ;;  %v2404_v16 = vld [vmem:[#allocation7] ss:$0 sm:$0xff]  ;;  %v773_v37 = vshrl.u32 %v772_v31, 7 }
  0xcc   : > { %2452 = vmatpush3.bf16.msra.mxu0 %v2648_v1  ;;  %s2947_s14 = smov 112   ;;  %s2948_s13 = smov 120   ;;  %v2392_v22 = vld [vmem:[#allocation12] ss:$0 sm:$0xff]  ;;  %v2950_v29 = vmov 1983009808  }
  0xcd   : > { %s2425_s24 = sshll.u32 %s3285_s25, 3  ;;  %2453 = vmatprep.subr.bf16.mxu0 %v2945_v0  ;;  %s2949_s23 = smov 104   ;;  %v770_v30 = vunpack.c.l.s4 %v2950_v29  ;;  %v2951_v34 = vmov 1934713408   ;;  %vm1345_vm2 = vcmask 64512   ;;  %vm1777_vm3 = vcmask 130048  }
  0xce   : > { %s589_s27 = scalar_lea.vmem %s3564_s1, %s2425_s24  ;;  %v802_v35 = vunpack.c.l.s4 %v2951_v34  ;;  %s3608_s30 = sld [smem:[#allocation26_spill]]  ;;  %vm2152_vm4 = vcmask 195584  }
  0xcf   : > { %v2650_v3 = vld [vmem:[%s589_s27] sm:$0xff]   ;;  %v771_v36 = vunpack.c.0.s8 %v770_v30  ;;  %s3609_s26 = sld [smem:[#allocation21_spill]]  ;;  %s2422_s27 = sshll.u32 %s2927_s20, 7 }
  0xd0   : > { %v2651_v4 = vld [vmem:[%s3606_s11] sm:$0xff]   ;;  %2454 = vmatpush3.bf16.msra.mxu0 %v2649_v2  ;;  %v2654_v6 = vld [vmem:[%s3607_s16 + $0x8] sm:$0xff]   ;;  %v803_v42 = vunpack.c.0.s8 %v802_v35  ;;  %s3610_s15 = sld [smem:[#allocation27_spill]]  ;;  %s2156_s20 = scalar_lea.sflag [#allocation6], %s3258_s2 }
  0xd1   : > { %v2653_v5 = vld [vmem:[%s3607_s16] sm:$0xff]   ;;  %2467 = vmatprep.subr.bf16.mxu0 %v2945_v0  ;;  %v2652_v7 = vld [vmem:[%s3606_s11 + $0x8] sm:$0xff]   ;;  %v3342_v43 = vsub.s32 %v771_v36, %v773_v37  ;;  %p3611_p5 = scmp.ne.s32.totalorder %s3601_s6, 0 }
  0xd2   : > { %2460 = vmatpush3.bf16.msra.mxu1 %v2653_v5  ;;  %v3348_v54 = vsub.s32 %v803_v42, %v773_v37 }
  0xd3   : > { %2456 = vmatmul.mubr.msk.bf16.vlgmr.msra.gmra.mrb[0].mxu0 %vm638_vm1, %v2650_v3  ;;  %2461 = vmatprep.subr.bf16.mxu1 %v2945_v0 }
  0xd4   : > { %2468 = vmatpush3.bf16.msra.mxu0 %v2651_v4  ;;  %2471 = vmatprep.mubr.msk.bf16.mxu0 %vm2946_vm0, %v2945_v0 }
  0xd5   : > { %2469 = vmatprep.subr.bf16.mxu0 %v2945_v0  ;;  %s592_s24 = scalar_lea.vmem %s3609_s26, %s3285_s25  ;;  %s2952_s25 = smov 16  }
  0xd6   : > { %2462 = vmatpush3.bf16.msra.mxu1 %v2654_v6  ;;  %s3513_s26 = scalar_lea.hbm %s3610_s15, %s2422_s27 }
  0xd7   : > { %2475 = vmatprep.subr.bf16.mxu1 %v2945_v0 }
  0xd8   : > { %2470 = vmatpush3.bf16.msra.mxu0 %v2652_v7 }
  0xd9   : > { %2464 = vmatmul.mubr.msk.bf16.vlgmr.msra.gmra.mrb[0].mxu1 %vm638_vm1, %v2650_v3  ;;  %2481 = vmatprep.subr.bf16.mxu0 %v2945_v0 }
  0xda   : > { %2477 = vmatprep.mubr.msk.bf16.mxu1 %vm2946_vm0, %v2945_v0 }
  0xdb   : > { %2472 = vmatmul.mubr.msk.bf16.vlgmr.msra.gmra.mrb[4].mxu0 %vm638_vm1, %v1358_v8 }
  0xdc   : > { %2483 = vmatprep.mubr.msk.bf16.mxu0 %vm2946_vm0, %v2945_v0 }
 0x1a6   : > { %v676_v10 = vpop.f32.mrb[0].mxu0 }
 0x1a7   : > { %v3322_v11 = vadd.f32 %v2387_v9, %v676_v10  ;;  %v2457_v12 = vpop.f32.mrb[1].mxu0 }
 0x1a8   : > { %v679_v13 = vpop.f32.mrb[2].mxu0 }
 0x1a9   : > { %755 = vrot.lane.b32.xlu1 %v3322_v11, %s2947_s14  ;;  %749 = vrot.lane.b32.xlu0 %v3322_v11, %s2948_s13  ;;  %v2458_v14 = vpop.f32.mrb[3].mxu0  ;;  %v680_v15 = vadd.f32 %v2387_v9, %v679_v13 }
 0x1ac   : > { %v740_v23 = vpop.f32.mrb[0].mxu1 }
 0x1ad   : > { %757 = vrot.lane.b32.xlu1 %v680_v15, %s2947_s14  ;;  %751 = vrot.lane.b32.xlu0 %v680_v15, %s2948_s13  ;;  %v3332_v24 = vadd.f32 %v2392_v22, %v740_v23  ;;  %v2465_v25 = vpop.f32.mrb[1].mxu1 }
 0x1ae   : > { %v1420_v17 = vpop.f32.mrb[4].mxu0  ;;  %v743_v26 = vpop.f32.mrb[2].mxu1 }
 0x1af   : > { %v2473_v18 = vpop.f32.mrb[5].mxu0  ;;  %v3327_v20 = vadd.f32 %v2404_v16, %v1420_v17  ;;  %v3334_v27 = vadd.f32 %v2392_v22, %v743_v26  ;;  %v2466_v28 = vpop.f32.mrb[3].mxu1 }
 0x1b0   : > { %v1423_v19 = vpop.f32.mrb[6].mxu0 }
 0x1b1   : > { %763 = vrot.lane.b32.xlu1 %v680_v15, %s2949_s23  ;;  %761 = vrot.lane.b32.xlu0 %v3322_v11, %s2949_s23  ;;  %v2474_v21 = vpop.f32.mrb[7].mxu0 }
 0x1b5   : > { %1430 = vrot.lane.b32.xlu1 %v3327_v20, %s2947_s14  ;;  %1427 = vrot.lane.b32.xlu0 %v3327_v20, %s2948_s13 }
 0x1b9   : > { %1433 = vrot.lane.b32.xlu0 %v3327_v20, %s2949_s23  ;;  %1041 = vrot.lane.b32.xlu1 %v3332_v24, %s2948_s13 }
 0x1bd   : > { %1043 = vrot.lane.b32.xlu0 %v3334_v27, %s2948_s13  ;;  %1047 = vrot.lane.b32.xlu1 %v3332_v24, %s2947_s14  ;;  %s2954_s13 = smov 24  }
 0x1c1   : > { %1049 = vrot.lane.b32.xlu0 %v3334_v27, %s2947_s14  ;;  %1053 = vrot.lane.b32.xlu1 %v3332_v24, %s2949_s23  ;;  %s2953_s14 = smov 8  }
 0x1c5   : > { %1055 = vrot.lane.b32.xlu0 %v3334_v27, %s2949_s23  ;;  %s2384_s23 = sshll.u32 %s3258_s2, 3 }
 0x1c6   : > { %s584_s28 = scalar_lea.vmem [#allocation15], %s2384_s23 }
 0x1c7   : > { %s2171_s9 = sshll.u32 %s584_s28, 4  ;;  %s3515_s9 = int_to_ptr.vmem [resolvable:$true] %s2171_s9 }
 0x21b   : > { %v756_v32 = vpop.permute.xlu1 %755  ;;  %v750_v33 = vpop.permute.xlu0 %749 }
 0x21c   : > { %v767_v44 = vcombine.low %v3322_v11, %v756_v32  ;;  %v768_v45 = vcombine.high %v3322_v11, %v756_v32 }
 0x21e   : > { %v775_v59 = vrot.slane %v767_v44, %v3342_v43  ;;  %v782_v60 = vrot.slane %v768_v45, %v3342_v43 }
 0x21f   : > { %v758_v38 = vpop.permute.xlu1 %757  ;;  %v752_v39 = vpop.permute.xlu0 %751 }
 0x220   : > { %v835_v40 = vcombine.low %v680_v15, %v758_v38  ;;  %v836_v41 = vcombine.high %v680_v15, %v758_v38 }
 0x222   : > { %v843_v52 = vrot.slane %v835_v40, %v3342_v43  ;;  %v850_v53 = vrot.slane %v836_v41, %v3342_v43 }
 0x223   : > { %v764_v46 = vpop.permute.xlu1 %763  ;;  %v762_v47 = vpop.permute.xlu0 %761 }
 0x224   : > { %v851_v48 = vcombine.low %v752_v39, %v764_v46  ;;  %v852_v49 = vcombine.high %v752_v39, %v764_v46  ;;  %v783_v50 = vcombine.low %v750_v33, %v762_v47  ;;  %v784_v51 = vcombine.high %v750_v33, %v762_v47  ;;  %v1332_v47 = vld [vmem:[%s3608_s30 + $0x8] sm:$0xff] }
 0x226   : > { %v859_v55 = vrot.slane %v851_v48, %v3342_v43  ;;  %v866_v56 = vrot.slane %v852_v49, %v3342_v43  ;;  %v791_v57 = vrot.slane %v783_v50, %v3342_v43  ;;  %v798_v58 = vrot.slane %v784_v51, %v3342_v43 }
 0x227   : > { %v1428_v33 = vpop.permute.xlu0 %1427 }
 0x228   : > { %v867_v61 = vcombine.low %v843_v52, %v859_v55  ;;  %v868_v62 = vcombine.high %v843_v52, %v859_v55  ;;  %v883_v63 = vcombine.low %v850_v53, %v866_v56  ;;  %v884_v1 = vcombine.high %v850_v53, %v866_v56 }
 0x229   : > { %v799_v2 = vcombine.low %v775_v59, %v791_v57  ;;  %v800_v3 = vcombine.high %v775_v59, %v791_v57  ;;  %v815_v4 = vcombine.low %v782_v60, %v798_v58  ;;  %v816_v5 = vcombine.high %v782_v60, %v798_v58  ;;  %v1331_v57 = vld [vmem:[%s3608_s30] sm:$0xff] }
 0x22a   : > { %v875_v6 = vrot.slane %v867_v61, %v3348_v54  ;;  %v882_v7 = vrot.slane %v868_v62, %v3348_v54  ;;  %v891_v8 = vrot.slane %v883_v63, %v3348_v54  ;;  %v898_v9 = vrot.slane %v884_v1, %v3348_v54  ;;  %v1431_v62 = vpop.permute.xlu1 %1430 }
 0x22b   : > { %v807_v10 = vrot.slane %v799_v2, %v3348_v54  ;;  %v814_v11 = vrot.slane %v800_v3, %v3348_v54  ;;  %v823_v12 = vrot.slane %v815_v4, %v3348_v54  ;;  %v830_v13 = vrot.slane %v816_v5, %v3348_v54  ;;  %v1434_v63 = vpop.permute.xlu0 %1433 }
 0x22c   : > { %v971_v14 = vcombine.low %v875_v6, %v882_v7  ;;  %v2398_v15 = vcombine.high %v875_v6, %v882_v7  ;;  %v987_v16 = vcombine.low %v891_v8, %v898_v9  ;;  %v2399_v17 = vcombine.high %v891_v8, %v898_v9 }
 0x22d   : > { %v903_v18 = vcombine.low %v807_v10, %v814_v11  ;;  %v2396_v19 = vcombine.high %v807_v10, %v814_v11  ;;  %v919_v21 = vcombine.low %v823_v12, %v830_v13  ;;  %v2397_v22 = vcombine.high %v823_v12, %v830_v13 }
 0x22e   : > { %v978_v23 = vrot.slane %v971_v14, %v3342_v43  ;;  %v986_v25 = vrot.slane %v2398_v15, %v3342_v43  ;;  %v994_v26 = vrot.slane %v987_v16, %v3342_v43  ;;  %v1002_v28 = vrot.slane %v2399_v17, %v3342_v43 }
 0x22f   : > { %v910_v29 = vrot.slane %v903_v18, %v3342_v43  ;;  %v918_v30 = vrot.slane %v2396_v19, %v3342_v43  ;;  %v926_v31 = vrot.slane %v919_v21, %v3342_v43  ;;  %v934_v32 = vrot.slane %v2397_v22, %v3342_v43 }
 0x230   : > { %v1003_v34 = vcombine.low %v978_v23, %v986_v25  ;;  %v1004_v35 = vcombine.high %v978_v23, %v986_v25  ;;  %v1019_v36 = vcombine.low %v994_v26, %v1002_v28  ;;  %v1020_v37 = vcombine.high %v994_v26, %v1002_v28 }
 0x231   : > { %v935_v38 = vcombine.low %v910_v29, %v918_v30  ;;  %v936_v39 = vcombine.high %v910_v29, %v918_v30  ;;  %v951_v40 = vcombine.low %v926_v31, %v934_v32  ;;  %v952_v41 = vcombine.high %v926_v31, %v934_v32 }
 0x232   : > { %v1011_v42 = vrot.slane %v1003_v34, %v3348_v54  ;;  %v1018_v44 = vrot.slane %v1004_v35, %v3348_v54  ;;  %v1027_v45 = vrot.slane %v1019_v36, %v3348_v54  ;;  %v1034_v46 = vrot.slane %v1020_v37, %v3348_v54 }
 0x233   : > { %v943_v48 = vrot.slane %v935_v38, %v3348_v54  ;;  %v950_v49 = vrot.slane %v936_v39, %v3348_v54  ;;  %v959_v50 = vrot.slane %v951_v40, %v3348_v54  ;;  %v966_v51 = vrot.slane %v952_v41, %v3348_v54 }
 0x234   : > { %v1035_v52 = vcombine.low %v1011_v42, %v1027_v45  ;;  %v1036_v53 = vcombine.high %v1011_v42, %v1027_v45  ;;  %v1037_v55 = vcombine.low %v1018_v44, %v1034_v46  ;;  %v1038_v56 = vcombine.high %v1018_v44, %v1034_v46 }
 0x235   : > { %v967_v58 = vcombine.low %v943_v48, %v959_v50  ;;  %v968_v59 = vcombine.high %v943_v48, %v959_v50  ;;  %v969_v60 = vcombine.low %v950_v49, %v966_v51  ;;  %v970_v61 = vcombine.high %v950_v49, %v966_v51 }
 0x236   : > { %v1334_v1 = vadd.f32 %v1332_v47, %v1035_v52  ;;  %v1336_v2 = vadd.f32 %v1332_v47, %v1036_v53  ;;  %v1338_v3 = vadd.f32 %v1332_v47, %v1037_v55  ;;  %v1340_v4 = vadd.f32 %v1332_v47, %v1038_v56 }
 0x237   : > { %v1333_v5 = vadd.f32 %v1331_v57, %v967_v58  ;;  %v1335_v6 = vadd.f32 %v1331_v57, %v968_v59  ;;  %v1337_v7 = vadd.f32 %v1331_v57, %v969_v60  ;;  %v1339_v8 = vadd.f32 %v1331_v57, %v970_v61  ;;  %v1042_v57 = vpop.permute.xlu1 %1041  ;;  %v1044_v60 = vpop.permute.xlu0 %1043 }
 0x238   : > { %v1436_v9 = vcombine.low %v3327_v20, %v1431_v62  ;;  %v1437_v10 = vcombine.high %v3327_v20, %v1431_v62  ;;  %v1452_v11 = vcombine.low %v1428_v33, %v1434_v63  ;;  %v1453_v12 = vcombine.high %v1428_v33, %v1434_v63 }
 0x239   : > { %v1341_v13 = vpack.c.bf16 %v1334_v1, %v1333_v5  ;;  %v1342_v14 = vpack.c.bf16 %v1336_v2, %v1335_v6  ;;  %v1343_v15 = vpack.c.bf16 %v1338_v3, %v1337_v7  ;;  %v1344_v16 = vpack.c.bf16 %v1340_v4, %v1339_v8 }
 0x23a   : > { %v1444_v17 = vrot.slane %v1436_v9, %v3342_v43  ;;  %v1451_v18 = vrot.slane %v1437_v10, %v3342_v43  ;;  %v1460_v19 = vrot.slane %v1452_v11, %v3342_v43  ;;  %v1467_v21 = vrot.slane %v1453_v12, %v3342_v43 }
 0x23b   : > { %1346 = vst.msk [vmem:[#allocation2] sm:$0xff] %vm1345_vm2, %v1341_v13  ;;  %1347 = vst.msk [vmem:[#allocation2 + $0x8] sm:$0xff] %vm1345_vm2, %v1342_v14  ;;  %v1048_v2 = vpop.permute.xlu1 %1047  ;;  %v1050_v5 = vpop.permute.xlu0 %1049 }
 0x23c   : > { %1348 = vst.msk [vmem:[#allocation2 + $0x10] sm:$0xff] %vm1345_vm2, %v1343_v15  ;;  %1349 = vst.msk [vmem:[#allocation2 + $0x18] sm:$0xff] %vm1345_vm2, %v1344_v16  ;;  %v1468_v20 = vcombine.low %v1444_v17, %v1460_v19  ;;  %v1469_v22 = vcombine.high %v1444_v17, %v1460_v19  ;;  %v1484_v23 = vcombine.low %v1451_v18, %v1467_v21 }
 0x23d   : > { %v1485_v25 = vcombine.high %v1451_v18, %v1467_v21  ;;  %v1059_v3 = vcombine.low %v3332_v24, %v1048_v2  ;;  %v1060_v4 = vcombine.high %v3332_v24, %v1048_v2  ;;  %v1127_v8 = vcombine.low %v3334_v27, %v1050_v5 }
 0x23e   : > { %v1476_v26 = vrot.slane %v1468_v20, %v3348_v54  ;;  %v1483_v28 = vrot.slane %v1469_v22, %v3348_v54  ;;  %v1492_v29 = vrot.slane %v1484_v23, %v3348_v54  ;;  %v1128_v9 = vcombine.high %v3334_v27, %v1050_v5 }
 0x23f   : > { %v1499_v30 = vrot.slane %v1485_v25, %v3348_v54  ;;  %v1054_v10 = vpop.permute.xlu1 %1053  ;;  %v1067_v11 = vrot.slane %v1059_v3, %v3342_v43  ;;  %v1074_v12 = vrot.slane %v1060_v4, %v3342_v43  ;;  %v1056_v15 = vpop.permute.xlu0 %1055  ;;  %v1135_v18 = vrot.slane %v1127_v8, %v3342_v43 }
 0x240   : > { %v1504_v31 = vcombine.low %v1476_v26, %v1483_v28  ;;  %v2408_v32 = vcombine.high %v1476_v26, %v1483_v28  ;;  %v1075_v13 = vcombine.low %v1042_v57, %v1054_v10  ;;  %v1076_v14 = vcombine.high %v1042_v57, %v1054_v10 }
 0x241   : > { %v1520_v33 = vcombine.low %v1492_v29, %v1499_v30  ;;  %v2409_v34 = vcombine.high %v1492_v29, %v1499_v30  ;;  %v1143_v17 = vcombine.low %v1044_v60, %v1056_v15  ;;  %v1142_v27 = vrot.slane %v1128_v9, %v3342_v43 }
 0x242   : > { %v1511_v35 = vrot.slane %v1504_v31, %v3342_v43  ;;  %v1519_v36 = vrot.slane %v2408_v32, %v3342_v43  ;;  %v1576_v39 = vld [vmem:[#allocation2] sm:$0xff]  ;;  %v1577_v40 = vld [vmem:[#allocation2 + $0x8] sm:$0xff]  ;;  %v1083_v24 = vrot.slane %v1075_v13, %v3342_v43  ;;  %v1090_v16 = vrot.slane %v1076_v14, %v3342_v43 }
 0x243   : > { %v1527_v37 = vrot.slane %v1520_v33, %v3342_v43  ;;  %v1535_v38 = vrot.slane %v2409_v34, %v3342_v43  ;;  %v1586_v41 = vsel %vm1345_vm2, %v1576_v39, 0  ;;  %v1632_v42 = vsel %vm1345_vm2, %v1577_v40, 0  ;;  %v1578_v52 = vld [vmem:[#allocation2 + $0x10] sm:$0xff]  ;;  %v1579_v53 = vld [vmem:[#allocation2 + $0x18] sm:$0xff] }
 0x244   : > { %v1536_v44 = vcombine.low %v1511_v35, %v1519_v36  ;;  %2476 = vmatpush3.bf16.xpose.msra.mxu1 %v1586_v41  ;;  %v1537_v46 = vcombine.high %v1511_v35, %v1519_v36  ;;  %2482 = vmatpush3.bf16.xpose.msra.mxu0 %v1632_v42  ;;  %v1678_v61 = vsel %vm1345_vm2, %v1578_v52, 0  ;;  %v1724_v62 = vsel %vm1345_vm2, %v1579_v53, 0 }
 0x245   : > { %v1552_v45 = vcombine.low %v1527_v37, %v1535_v38  ;;  %v1553_v47 = vcombine.high %v1527_v37, %v1535_v38  ;;  %2487 = vmatprep.subr.bf16.mxu1 %v2945_v0  ;;  %2493 = vmatprep.subr.bf16.mxu0 %v2945_v0  ;;  %v1144_v19 = vcombine.high %v1044_v60, %v1056_v15 }
 0x246   : > { %v1544_v48 = vrot.slane %v1536_v44, %v3348_v54  ;;  %v1551_v55 = vrot.slane %v1537_v46, %v3348_v54  ;;  %v1091_v21 = vcombine.low %v1067_v11, %v1083_v24  ;;  %v1092_v20 = vcombine.high %v1067_v11, %v1083_v24 }
 0x247   : > { %v1560_v49 = vrot.slane %v1552_v45, %v3348_v54  ;;  %v1567_v56 = vrot.slane %v1553_v47, %v3348_v54  ;;  %v1107_v22 = vcombine.low %v1074_v12, %v1090_v16  ;;  %v1108_v23 = vcombine.high %v1074_v12, %v1090_v16 }
 0x248   : > { %v1151_v25 = vrot.slane %v1143_v17, %v3342_v43  ;;  %v1158_v26 = vrot.slane %v1144_v19, %v3342_v43  ;;  %v1099_v28 = vrot.slane %v1091_v21, %v3348_v54  ;;  %v1106_v29 = vrot.slane %v1092_v20, %v3348_v54 }
 0x249   : > { %v1568_v50 = vcombine.low %v1544_v48, %v1560_v49  ;;  %v1569_v51 = vcombine.high %v1544_v48, %v1560_v49  ;;  %v1570_v63 = vcombine.low %v1551_v55, %v1567_v56  ;;  %v1571_v1 = vcombine.high %v1551_v55, %v1567_v56 }
 0x24a   : > { %v1115_v30 = vrot.slane %v1107_v22, %v3348_v54  ;;  %v1122_v31 = vrot.slane %v1108_v23, %v3348_v54  ;;  %v1159_v32 = vcombine.low %v1135_v18, %v1151_v25  ;;  %v1160_v33 = vcombine.high %v1135_v18, %v1151_v25  ;;  %v1580_v23 = vld [vmem:[#allocation13] sm:$0xff] }
 0x24b   : > { %v1572_v58 = vpack.c.bf16 %v1568_v50, %v1568_v50  ;;  %v1573_v59 = vpack.c.bf16 %v1569_v51, %v1569_v51  ;;  %v1574_v6 = vpack.c.bf16 %v1570_v63, %v1570_v63  ;;  %v1575_v7 = vpack.c.bf16 %v1571_v1, %v1571_v1 }
 0x24c   : > { %v1175_v34 = vcombine.low %v1142_v27, %v1158_v26  ;;  %v1176_v35 = vcombine.high %v1142_v27, %v1158_v26  ;;  %v1195_v36 = vcombine.low %v1099_v28, %v1106_v29  ;;  %v2400_v37 = vcombine.high %v1099_v28, %v1106_v29  ;;  %v2414_v28 = vld [vmem:[%s592_s24] ss:$0 sm:$0xff]  ;;  %s2841_s24 = scalar_lea.vmem %s3515_s9, 128 }
 0x24d   : > { %2478 = vmatmul.mubr.msk.bf16.vlgmr.msra.gmra.mrb[4].mxu1 %vm1345_vm2, %v1572_v58  ;;  %2484 = vmatmul.mubr.msk.bf16.vlgmr.msra.gmra.mrb[8].mxu0 %vm1345_vm2, %v1573_v59  ;;  %v1211_v38 = vcombine.low %v1115_v30, %v1122_v31  ;;  %v2401_v39 = vcombine.high %v1115_v30, %v1122_v31  ;;  %v1167_v40 = vrot.slane %v1159_v32, %v3348_v54  ;;  %p2842_p2 = scmp.ne.s32.totalorder %s3515_s9, %s2841_s24 }
 0x24e   : > { %2488 = vmatpush3.bf16.xpose.msra.mxu1 %v1678_v61  ;;  %2494 = vmatpush3.bf16.xpose.msra.mxu0 %v1724_v62  ;;  %v1174_v41 = vrot.slane %v1160_v33, %v3348_v54  ;;  %v1183_v42 = vrot.slane %v1175_v34, %v3348_v54  ;;  %v1190_v44 = vrot.slane %v1176_v35, %v3348_v54 }
 0x24f   : > { %2489 = vmatprep.mubr.msk.bf16.mxu1 %vm2946_vm0, %v2945_v0  ;;  %2495 = vmatprep.mubr.msk.bf16.mxu0 %vm2946_vm0, %v2945_v0  ;;  %v1202_v45 = vrot.slane %v1195_v36, %v3342_v43  ;;  %v1210_v46 = vrot.slane %v2400_v37, %v3342_v43  ;;  %v1218_v47 = vrot.slane %v1211_v38, %v3342_v43  ;;  %p2843_p7 = pnand %p2842_p2, %p3611_p5 }
 0x250   : > { %2499 = vmatprep.subr.bf16.mxu1 %v2945_v0  ;;  %2505 = vmatprep.subr.bf16.mxu0 %v2945_v0  ;;  %v1226_v48 = vrot.slane %v2401_v39, %v3342_v43  ;;  %v1263_v49 = vcombine.low %v1167_v40, %v1174_v41  ;;  %v2402_v50 = vcombine.high %v1167_v40, %v1174_v41 }
 0x251   : > { %v1279_v51 = vcombine.low %v1183_v42, %v1190_v44  ;;  %v2403_v52 = vcombine.high %v1183_v42, %v1190_v44  ;;  %v1227_v53 = vcombine.low %v1202_v45, %v1210_v46  ;;  %v1228_v55 = vcombine.high %v1202_v45, %v1210_v46  ;;  %p2844_p11 = pneg %p2843_p7 }
 0x252   : > { %v1243_v56 = vcombine.low %v1218_v47, %v1226_v48  ;;  %v1244_v57 = vcombine.high %v1218_v47, %v1226_v48  ;;  %v1270_v58 = vrot.slane %v1263_v49, %v3342_v43  ;;  %v1278_v59 = vrot.slane %v2402_v50, %v3342_v43 }
 0x253   : > { %v1286_v60 = vrot.slane %v1279_v51, %v3342_v43  ;;  %v1294_v61 = vrot.slane %v2403_v52, %v3342_v43  ;;  %v1235_v62 = vrot.slane %v1227_v53, %v3348_v54  ;;  %v1242_v63 = vrot.slane %v1228_v55, %v3348_v54 }
 0x254   : > { %v1251_v1 = vrot.slane %v1243_v56, %v3348_v54  ;;  %v1258_v2 = vrot.slane %v1244_v57, %v3348_v54  ;;  %v1295_v3 = vcombine.low %v1270_v58, %v1278_v59  ;;  %v1296_v4 = vcombine.high %v1270_v58, %v1278_v59 }
 0x255   : > { %2490 = vmatmul.mubr.msk.bf16.vlgmr.msra.gmra.mrb[8].mxu1 %vm1345_vm2, %v1574_v6  ;;  %2496 = vmatmul.mubr.msk.bf16.vlgmr.msra.gmra.mrb[12].mxu0 %vm1345_vm2, %v1575_v7  ;;  %v1311_v5 = vcombine.low %v1286_v60, %v1294_v61  ;;  %v1312_v6 = vcombine.high %v1286_v60, %v1294_v61 }
 0x256   : > { %2501 = vmatprep.mubr.msk.bf16.mxu1 %vm2946_vm0, %v2945_v0  ;;  %2507 = vmatprep.mubr.msk.bf16.mxu0 %vm2946_vm0, %v2945_v0  ;;  %v1259_v7 = vcombine.low %v1235_v62, %v1251_v1  ;;  %v1260_v8 = vcombine.high %v1235_v62, %v1251_v1  ;;  %v1261_v9 = vcombine.low %v1242_v63, %v1258_v2 }
 0x257   : > { %v1262_v10 = vcombine.high %v1242_v63, %v1258_v2  ;;  %v1303_v11 = vrot.slane %v1295_v3, %v3348_v54  ;;  %v1310_v12 = vrot.slane %v1296_v4, %v3348_v54  ;;  %v1319_v13 = vrot.slane %v1311_v5, %v3348_v54 }
 0x258   : > { %v1326_v14 = vrot.slane %v1312_v6, %v3348_v54 }
 0x259   : > { %v1327_v15 = vcombine.low %v1303_v11, %v1319_v13  ;;  %v1328_v24 = vcombine.high %v1303_v11, %v1319_v13 }
 0x25a   : > { %v1329_v16 = vcombine.low %v1310_v12, %v1326_v14  ;;  %v1330_v17 = vcombine.high %v1310_v12, %v1326_v14 }
 0x25b   : > { %v1350_v18 = vpack.c.bf16 %v1327_v15, %v1259_v7  ;;  %v1351_v27 = vpack.c.bf16 %v1328_v24, %v1260_v8 }
 0x25c   : > { %v1352_v19 = vpack.c.bf16 %v1329_v16, %v1261_v9  ;;  %v1353_v21 = vpack.c.bf16 %v1330_v17, %v1262_v10 }
 0x25d   : > { %1354 = vst.msk [vmem:[#allocation3] sm:$0xff] %vm1345_vm2, %v1350_v18  ;;  %1355 = vst.msk [vmem:[#allocation3 + $0x8] sm:$0xff] %vm1345_vm2, %v1351_v27 }
 0x25e   : > { %1356 = vst.msk [vmem:[#allocation3 + $0x10] sm:$0xff] %vm1345_vm2, %v1352_v19  ;;  %1357 = vst.msk [vmem:[#allocation3 + $0x18] sm:$0xff] %vm1345_vm2, %v1353_v21 }
 0x264   : > { %v1818_v20 = vld [vmem:[#allocation3] sm:$0xff]  ;;  %v1819_v22 = vld [vmem:[#allocation3 + $0x8] sm:$0xff] }
 0x265   : > { %2500 = vmatpush3.bf16.msra.mxu1 %v1818_v20  ;;  %2506 = vmatpush3.bf16.msra.mxu0 %v1819_v22  ;;  %v1820_v12 = vld [vmem:[#allocation3 + $0x10] sm:$0xff]  ;;  %v1821_v13 = vld [vmem:[#allocation3 + $0x18] sm:$0xff] }
 0x266   : > { %2511 = vmatprep.subr.bf16.mxu1 %v2945_v0  ;;  %2517 = vmatprep.subr.bf16.mxu0 %v2945_v0 }
 0x320   : > { %v1622_v25 = vpop.f32.mrb[4].mxu1  ;;  %v1668_v26 = vpop.f32.mrb[8].mxu0 }
 0x321   : > { %v1623_v29 = vadd.f32 %v1622_v25, %v1580_v23  ;;  %v1669_v30 = vadd.f32 %v1668_v26, %v1580_v23  ;;  %v2479_v31 = vpop.f32.mrb[5].mxu1  ;;  %v2485_v32 = vpop.f32.mrb[9].mxu0 }
 0x322   : > { %v1625_v33 = vpop.f32.mrb[6].mxu1  ;;  %v1671_v34 = vpop.f32.mrb[10].mxu0 }
 0x323   : > { %v2480_v35 = vpop.f32.mrb[7].mxu1  ;;  %v2486_v36 = vpop.f32.mrb[11].mxu0  ;;  %v1773_v37 = vadd.f32 %v2414_v28, %v1623_v29  ;;  %v1774_v38 = vadd.f32 %v2414_v28, %v1669_v30 }
 0x325   : > { %v1778_v39 = vsel %vm1777_vm3, %v1773_v37, -inf  ;;  %v1781_v40 = vsel %vm1777_vm3, %v1774_v38, -inf }
 0x326   : > { %1779 = vmax.xlane.f32.xlu1 %v1778_v39  ;;  %1782 = vmax.xlane.f32.xlu0 %v1781_v40 }
 0x328   : > { %v1714_v41 = vpop.f32.mrb[8].mxu1  ;;  %v1760_v42 = vpop.f32.mrb[12].mxu0 }
 0x329   : > { %v1715_v44 = vadd.f32 %v1714_v41, %v1580_v23  ;;  %v1761_v45 = vadd.f32 %v1760_v42, %v1580_v23  ;;  %v2491_v46 = vpop.f32.mrb[9].mxu1  ;;  %v2497_v47 = vpop.f32.mrb[13].mxu0 }
 0x32a   : > { %v1717_v48 = vpop.f32.mrb[10].mxu1  ;;  %v1763_v49 = vpop.f32.mrb[14].mxu0 }
 0x32b   : > { %v2492_v50 = vpop.f32.mrb[11].mxu1  ;;  %v2498_v51 = vpop.f32.mrb[15].mxu0  ;;  %v1775_v52 = vadd.f32 %v2414_v28, %v1715_v44  ;;  %v1776_v53 = vadd.f32 %v2414_v28, %v1761_v45 }
 0x32d   : > { %v1784_v55 = vsel %vm1777_vm3, %v1775_v52, -inf  ;;  %v1787_v56 = vsel %vm1777_vm3, %v1776_v53, -inf }
 0x32e   : > { %1785 = vmax.xlane.f32.xlu0 %v1784_v55  ;;  %1788 = vmax.xlane.f32.xlu1 %v1787_v56 }
 0x3b3   : > { %v1780_v57 = vpop.xlane.xlu1 %1779  ;;  %v1783_v58 = vpop.xlane.xlu0 %1782 }
 0x3b4   : > { %v1790_v59 = vsub.f32 %v1773_v37, %v1780_v57  ;;  %v1791_v60 = vsub.f32 %v1774_v38, %v1783_v58 }
 0x3b6   : > { %v1794_v61 = vmul.f32 1.442695, %v1790_v59  ;;  %v1796_v62 = vmul.f32 1.442695, %v1791_v60 }
 0x3b8   : > { %2655 = vpow2.f32 %v1794_v61 }
 0x3b9   : > { %2657 = vpow2.f32 %v1796_v62 }
 0x3bb   : > { %v1786_v63 = vpop.xlane.xlu0 %1785  ;;  %v1789_v1 = vpop.xlane.xlu1 %1788 }
 0x3bc   : > { %v1792_v2 = vsub.f32 %v1775_v52, %v1786_v63  ;;  %v1793_v3 = vsub.f32 %v1776_v53, %v1789_v1 }
 0x3be   : > { %v1798_v4 = vmul.f32 1.442695, %v1792_v2  ;;  %v1800_v5 = vmul.f32 1.442695, %v1793_v3 }
 0x3c0   : > { %2659 = vpow2.f32 %v1798_v4 }
 0x3c1   : > { %2661 = vpow2.f32 %v1800_v5 }
 0x3c2   : > { %v2656_v6 = vpop.eup %2655 }
 0x3c3   : > { %v2658_v7 = vpop.eup %2657  ;;  %v1802_v8 = vsel %vm1777_vm3, %v2656_v6, 0.0  ;;  %v1814_v9 = vpack.c.bf16 %v2656_v6, %v2656_v6 }
 0x3c4   : > { %1803 = vadd.xlane.f32.xlu0 %v1802_v8  ;;  %v1805_v10 = vsel %vm1777_vm3, %v2658_v7, 0.0  ;;  %v1815_v11 = vpack.c.bf16 %v2658_v7, %v2658_v7 }
 0x3c5   : > { %1806 = vadd.xlane.f32.xlu1 %v1805_v10  ;;  %2502 = vmatmul.mubr.msk.bf16.vlgmr.msra.gmra.mrb[12].mxu1 %vm1777_vm3, %v1814_v9 }
 0x3c6   : > { %2508 = vmatmul.mubr.msk.bf16.vlgmr.msra.gmra.mrb[16].mxu0 %vm1777_vm3, %v1815_v11  ;;  %2512 = vmatpush3.bf16.msra.mxu1 %v1820_v12 }
 0x3c7   : > { %2518 = vmatpush3.bf16.msra.mxu0 %v1821_v13  ;;  %2513 = vmatprep.mubr.msk.bf16.mxu1 %vm2946_vm0, %v2945_v0 }
 0x3c8   : > { %2519 = vmatprep.mubr.msk.bf16.mxu0 %vm2946_vm0, %v2945_v0 }
 0x3ca   : > { %v2660_v14 = vpop.eup %2659 }
 0x3cb   : > { %v2662_v15 = vpop.eup %2661  ;;  %v1808_v24 = vsel %vm1777_vm3, %v2660_v14, 0.0  ;;  %v1816_v16 = vpack.c.bf16 %v2660_v14, %v2660_v14 }
 0x3cc   : > { %1809 = vadd.xlane.f32.xlu0 %v1808_v24  ;;  %v1811_v17 = vsel %vm1777_vm3, %v2662_v15, 0.0  ;;  %v1817_v18 = vpack.c.bf16 %v2662_v15, %v2662_v15 }
 0x3cd   : > { %1812 = vadd.xlane.f32.xlu1 %v1811_v17  ;;  %2514 = vmatmul.mubr.msk.bf16.vlgmr.msra.gmra.mrb[16].mxu1 %vm1777_vm3, %v1816_v16 }
 0x3ce   : > { %2520 = vmatmul.mubr.msk.bf16.vlgmr.msra.gmra.mrb[20].mxu0 %vm1777_vm3, %v1817_v18 }
 0x451   : > { %v1804_v27 = vpop.xlane.xlu0 %1803 }
 0x452   : > { %v1807_v19 = vpop.xlane.xlu1 %1806  ;;  %2663 = vrcp.f32 %v1804_v27 }
 0x453   : > { %2665 = vrcp.f32 %v1807_v19 }
 0x459   : > { %v1810_v21 = vpop.xlane.xlu0 %1809 }
 0x45a   : > { %v1813_v20 = vpop.xlane.xlu1 %1812  ;;  %2667 = vrcp.f32 %v1810_v21 }
 0x45b   : > { %2669 = vrcp.f32 %v1813_v20 }
 0x45c   : > { %v2664_v31 = vpop.eup %2663 }
 0x45d   : > { %v2666_v32 = vpop.eup %2665 }
 0x464   : > { %v2668_v33 = vpop.eup %2667 }
 0x465   : > { %v2670_v35 = vpop.eup %2669 }
 0x498   : > { %v1859_v0 = vpop.f32.mrb[12].mxu1 }
 0x499   : > { %v1902_v22 = vpop.f32.mrb[16].mxu0  ;;  %v2503_v23 = vpop.f32.mrb[13].mxu1  ;;  %v1998_v36 = vmul.f32 %v2664_v31, %v1859_v0 }
 0x49a   : > { %v2509_v25 = vpop.f32.mrb[17].mxu0  ;;  %v1862_v26 = vpop.f32.mrb[14].mxu1  ;;  %v1999_v40 = vmul.f32 %v2666_v32, %v1902_v22 }
 0x49b   : > { %v1905_v28 = vpop.f32.mrb[18].mxu0  ;;  %v2504_v29 = vpop.f32.mrb[15].mxu1 }
 0x49c   : > { %v2510_v30 = vpop.f32.mrb[19].mxu0 }
 0x4a0   : > { %v1945_v34 = vpop.f32.mrb[16].mxu1 }
 0x4a1   : > { %v2000_v37 = vmul.f32 %v2668_v33, %v1945_v34  ;;  %v1988_v38 = vpop.f32.mrb[20].mxu0  ;;  %v2515_v39 = vpop.f32.mrb[17].mxu1 }
 0x4a2   : > { %v2001_v41 = vmul.f32 %v2670_v35, %v1988_v38  ;;  %v2521_v42 = vpop.f32.mrb[21].mxu0  ;;  %v1948_v44 = vpop.f32.mrb[18].mxu1 }
 0x4a3   : > { %v2002_v45 = vcombine.low %v1998_v36, %v2000_v37  ;;  %v2003_v46 = vcombine.high %v1998_v36, %v2000_v37  ;;  %v1991_v47 = vpop.f32.mrb[22].mxu0  ;;  %v2516_v48 = vpop.f32.mrb[19].mxu1 }
 0x4a4   : > { %v2018_v49 = vcombine.low %v1999_v40, %v2001_v41  ;;  %v2019_v50 = vcombine.high %v1999_v40, %v2001_v41  ;;  %v2522_v51 = vpop.f32.mrb[23].mxu0 }
 0x4a5   : > { %v2010_v52 = vrot.slane %v2002_v45, %v3342_v43  ;;  %v2017_v53 = vrot.slane %v2003_v46, %v3342_v43 }
 0x4a6   : > { %v2026_v55 = vrot.slane %v2018_v49, %v3342_v43  ;;  %v2033_v56 = vrot.slane %v2019_v50, %v3342_v43 }
 0x4a8   : > { %v2034_v57 = vcombine.low %v2010_v52, %v2026_v55  ;;  %v2035_v58 = vcombine.high %v2010_v52, %v2026_v55  ;;  %v2050_v59 = vcombine.low %v2017_v53, %v2033_v56  ;;  %v2051_v60 = vcombine.high %v2017_v53, %v2033_v56 }
 0x4aa   : > { %v2042_v61 = vrot.slane %v2034_v57, %v3348_v54  ;;  %v2049_v62 = vrot.slane %v2035_v58, %v3348_v54  ;;  %v2058_v63 = vrot.slane %v2050_v59, %v3348_v54  ;;  %v2065_v1 = vrot.slane %v2051_v60, %v3348_v54 }
 0x4ac   : > { %v2070_v2 = vcombine.low %v2042_v61, %v2049_v62  ;;  %v2419_v3 = vcombine.high %v2042_v61, %v2049_v62  ;;  %v2086_v4 = vcombine.low %v2058_v63, %v2065_v1  ;;  %v2420_v5 = vcombine.high %v2058_v63, %v2065_v1 }
 0x4ae   : > { %v2077_v6 = vrot.slane %v2070_v2, %v3342_v43  ;;  %v2085_v7 = vrot.slane %v2419_v3, %v3342_v43  ;;  %v2093_v8 = vrot.slane %v2086_v4, %v3342_v43  ;;  %v2101_v9 = vrot.slane %v2420_v5, %v3342_v43 }
 0x4b0   : > { %v2103_v10 = vcombine.high %v2077_v6, %v2085_v7  ;;  %v2119_v11 = vcombine.high %v2093_v8, %v2101_v9  ;;  %v2102_v12 = vcombine.low %v2077_v6, %v2085_v7  ;;  %v2118_v13 = vcombine.low %v2093_v8, %v2101_v9 }
 0x4b2   : > { %v2117_v14 = vrot.slane %v2103_v10, %v3348_v54  ;;  %v2133_v15 = vrot.slane %v2119_v11, %v3348_v54  ;;  %v2110_v24 = vrot.slane %v2102_v12, %v3348_v54  ;;  %v2126_v16 = vrot.slane %v2118_v13, %v3348_v54 }
 0x4b4   : > { %v2136_v17 = vcombine.low %v2117_v14, %v2133_v15  ;;  %v2135_v18 = vcombine.high %v2110_v24, %v2126_v16  ;;  %v2137_v27 = vcombine.high %v2117_v14, %v2133_v15  ;;  %v2134_v19 = vcombine.low %v2110_v24, %v2126_v16 }
 0x4b6   : > { %2143 = vrot.lane.b32.xlu1 %v2136_v17, %s2952_s25  ;;  %2139 = vrot.lane.b32.xlu0 %v2135_v18, %s2953_s14  ;;  %s2955_s25 = smov [#allocation15]  }
 0x4b7   : > { %s2845_s14 = sshll.u32 %s2955_s25, 4  ;;  %s2846_s14 = int_to_ptr.vmem [resolvable:$false] %s2845_s14 }
 0x4b8   : > { %p2848_p12 = scmp.lt.s32.totalorder %s3515_s9, %s2846_s14 }
 0x4ba   : > { %2147 = vrot.lane.b32.xlu1 %v2137_v27, %s2954_s13  ;;  %s2847_s13 = scalar_lea.vmem %s2846_s14, 256 }
 0x4bb   : > { %p2849_p0 = scmp.lt.s32.totalorder %s2847_s13, %s2841_s24 }
 0x4bd   : > { %p2850_p8 = por %p2849_p0, %p2848_p12 }
 0x4bf   : > { %p2851_p9 = pnand %p2850_p8, %p2844_p11 }
 0x528   : > { %v2144_v43 = vpop.permute.xlu1 %2143  ;;  %v2140_v21 = vpop.permute.xlu0 %2139 }
 0x529   : > { %v2150_v20 = vsel %vm1345_vm2, %v2134_v19, %v2140_v21 }
 0x52a   : > { %v2151_v0 = vsel %vm1777_vm3, %v2150_v20, %v2144_v43 }
 0x52c   : > { %v2148_v54 = vpop.permute.xlu1 %2147 }
 0x52d   : > { %v2153_v22 = vsel %vm2152_vm4, %v2151_v0, %v2148_v54 }
 0x52e   : > { %2154 = vst.msk [vmem:[%s584_s28] sm:$0xff] %vm638_vm1, %v2153_v22 }
 0x52f   : > { %2854 = shalt.err (!%p2851_p9)
}
 0x530   : > { %s2855_s2 = scalar_lea.hbm %s3513_s26, 128  ;;  %s2859_s28 = scalar_lea.hbm %s3610_s15, 256 }
 0x531   : > { %p2856_p1 = scmp.ne.s32.totalorder %s3513_s26, %s2855_s2  ;;  %p2860_p4 = scmp.lt.u32.totalorder %s3513_s26, %s3610_s15 }
 0x532   : > { %p2861_p13 = scmp.lt.u32.totalorder %s2859_s28, %s2855_s2  ;;  %p2863_p2 = scmp.lt.u32.totalorder %s2855_s2, %s3513_s26 }
 0x533   : > { %p2857_p3 = pnand %p2856_p1, %p3611_p5 }
 0x534   : > { %p2862_p6 = por %p2861_p13, %p2860_p4 }
 0x535   : > { %p2858_p10 = pneg %p2857_p3 }
 0x536   : > { %p2864_p7 = por %p2863_p2, %p2862_p6 }
 0x538   : > { %p2865_p11 = pnand %p2864_p7, %p2858_p10 }
 0x53a   : > { %2868 = shalt.err (!%p2865_p11)
}
 0x53b   : > { %2545 = dma.vmem_to_hbm [thread:$0]  (%p3611_p5), %s3515_s9, 128, %s3513_s26, %s2156_s20  }
 0x53c PF: > { %s2183_s24 = sand.u32 1, %s2915_s17   ;;  %p3612_p12 = scmp.ne.s32.totalorder %s3602_s7, 0 }
 0x53d   : > { %p3613_p0 = scmp.ge.s32.totalorder %s2935_s22, 2  ;;  %s2184_s25 = scalar_lea.sflag [#allocation6], %s2183_s24 }
 0x53f   : > { %p2568_p8 = pnand %p3613_p0, %p3612_p12 }
 0x541   : > { %2910 = dma.done.wait (!%p2568_p8), %s2184_s25, 128  }
 0x542   : > { %2912 = vsyncadd (!%p2568_p8), %s2184_s25, 4294967168  ;;  %s30_s22 = sadd.s32 1, %s2935_s22   ;;  %s3614_s17 = smov %s2919_s18 }
 0x543   : > { %p27_p9 = scmp.ge.s32.totalorder %s30_s22, 4   ;;  %s3615_s18 = smov %s2923_s19 }
 0x544   : > { %s3616_s19 = smov %s3209_s3  ;;  %s3617_s20 = smov %s2931_s21 }
 0x545   : > { %s3618_s21 = smov %s3620_s29  ;;  %29 = sbr.rel (!%p27_p9) target bundleno = 17 (0x11), region = 150 }
 0x54c   :  { %2189 = vsyncpa [#allocation5], 1 }
 0x54d   :  { %2191 = vsyncpa [#allocation5 + $0x1], 1 }
 0x54e   :  { %2192 = vsyncpa [#allocation8], 1 }
 0x54f   :  { %2193 = vsyncpa [#allocation11], 1 }
 0x550   :  { %2194 = vsyncpa [#allocation14], 1 }
 0x551   :  { %2195 = vsyncpa [#allocation6], 1 }
 0x552   :  { %2197 = vsyncpa [#allocation6 + $0x1], 1 }

</bundles_post_ra>
